<compile_context>
chip_gen: v6e
topology: v6e:2x2x1
jax: 0.10.0
libtpu: 0.0.40
codegen_flags: <defaults>
</compile_context>

<pallas_src>
import functools

import jax
import jax.numpy as jnp
import numpy as np
from jax import lax
from jax.experimental import pallas as pl
from jax.experimental.pallas import tpu as pltpu


def _round_up(x, m):
    return (x + m - 1) // m * m


# ---------------------------------------------------------------------------
# Pallas kernel: one (batch, cout-tile) per grid step; in-kernel band loop
# with manual double-buffered DMA of overlapping row windows.
# ---------------------------------------------------------------------------
def _repvgg_kernel(x_hbm, w_ref, b_ref, o_ref, xbuf, sem, *, nb, w_img):
    """x_hbm : (N, H_pad+2, Wp, Cpi) bf16 padded NHWC activation (HBM, pl.ANY)
       w_ref : (9*Cpi, TN)           bf16 folded weight tile (rows: ky,kx,ci)
       b_ref : (1, TN)               f32  merged bias tile
       o_ref : (1, H_pad*W, TN)      bf16 output tile, spatial flattened
       xbuf  : (2, band_h+2, Wp, Cpi) bf16 VMEM double buffer
       sem   : (2,) DMA semaphores
    """
    band_h = xbuf.shape[1] - 2
    cpi = xbuf.shape[3]
    tn = w_ref.shape[1]
    rows = band_h * w_img

    b = pl.program_id(0)

    def band_copy(band, slot):
        r0 = pl.multiple_of(band * band_h, band_h)
        return pltpu.make_async_copy(
            x_hbm.at[b, pl.ds(r0, band_h + 2)], xbuf.at[slot], sem.at[slot])

    # Prime the pipeline with band 0.
    band_copy(0, 0).start()

    @pl.loop(0, nb)
    def _(band):
        slot = band % 2
        band_copy(band, slot).wait()

        # Prefetch the next overlapping row window while computing this one.
        @pl.when(band + 1 < nb)
        def _():
            band_copy(band + 1, 1 - slot).start()

        xb = xbuf[slot]                                   # (band_h+2, Wp, Cpi)

        # Width-only im2col: 3 dx taps along the (128-aligned) channel axis.
        p = jnp.concatenate(
            [xb[:, dx:dx + w_img, :] for dx in range(3)], axis=-1)
        p = p.reshape((band_h + 2) * w_img, 3 * cpi)      # ((band_h+2)*W, 3*Cpi)

        # 3 accumulated MXU matmuls over ky; row offset ky*W is sublane-aligned.
        acc = jnp.dot(p[0:rows, :], w_ref[0:3 * cpi, :],
                      preferred_element_type=jnp.float32)
        for ky in (1, 2):
            acc += jnp.dot(p[ky * w_img:ky * w_img + rows, :],
                           w_ref[ky * 3 * cpi:(ky + 1) * 3 * cpi, :],
                           preferred_element_type=jnp.float32)

        y = jnp.maximum(acc + b_ref[...], 0.0).astype(o_ref.dtype)
        off = pl.multiple_of(band * rows, rows)
        o_ref[0, pl.ds(off, rows), :] = y


# ---------------------------------------------------------------------------
# Wrapper
# ---------------------------------------------------------------------------
@functools.partial(jax.jit, static_argnames=("c_out", "band_h"))
def repvgg_block(x_nchw, w_eq, b_eq, *, c_out, band_h=None):
    """x_nchw: (N, Cin, H, W) f32.  w_eq/b_eq from reparam_fold().
    Returns (N, c_out, H, W) f32."""
    n, c_in, h, w = x_nchw.shape
    cpo = w_eq.shape[1]
    cpi = w_eq.shape[0] // 9

    if band_h is None:
        band_h = max(8, min(512 // max(w, 1), 1024))  # aim for M = band_h*W ~512
    band_h = max(1, min(band_h, h))
    h_pad = _round_up(h, band_h)
    nb = h_pad // band_h
    wp = _round_up(w + 2, 16)                         # bf16 sublane tile

    # Cout tile: 256 fills v6e/v7x 256x256 MXUs; falls back to 128 (v5e-friendly).
    tn = 256 if cpo % 256 == 0 else 128
    if cpo % tn != 0:
        tn = cpo
    jc = cpo // tn

    # Single transpose+cast and ONE combined pad (channel, halo, H_pad, Wp).
    x = jnp.transpose(x_nchw, (0, 2, 3, 1)).astype(jnp.bfloat16)
    x = jnp.pad(x, ((0, 0), (1, h_pad - h + 1), (1, wp - w - 1), (0, cpi - c_in)))
    # shape: (N, H_pad+2, Wp, Cpi), zero halo / zero channel lanes.

    kern = functools.partial(_repvgg_kernel, nb=nb, w_img=w)
    out = pl.pallas_call(
        kern,
        out_shape=jax.ShapeDtypeStruct((n, h_pad * w, cpo), jnp.bfloat16),
        grid=(n, jc),
        in_specs=[
            pl.BlockSpec(memory_space=pl.ANY),                       # activation
            pl.BlockSpec((9 * cpi, tn), lambda b, j: (0, j)),        # weight tile
            pl.BlockSpec((1, tn), lambda b, j: (0, j)),              # bias tile
        ],
        out_specs=pl.BlockSpec((1, h_pad * w, tn), lambda b, j: (b, 0, j)),
        scratch_shapes=[
            pltpu.VMEM((2, band_h + 2, wp, cpi), jnp.bfloat16),
            pltpu.SemaphoreType.DMA((2,)),
        ],
        compiler_params=pltpu.CompilerParams(
            dimension_semantics=("parallel", "parallel"),
            vmem_limit_bytes=48 * 1024 * 1024),
    )(x, w_eq, b_eq)

    out = out.reshape(n, h_pad, w, cpo)[:, :h, :, :c_out]
    return jnp.transpose(out, (0, 3, 1, 2)).astype(jnp.float32)


# ---------------------------------------------------------------------------
# Parameter construction / re-parameterization (plain JAX glue)
# ---------------------------------------------------------------------------
def fold_bn(gamma, beta, mean, var, eps=1e-5):
    scale = gamma / jnp.sqrt(var + eps)
    return scale, beta - mean * scale


def reparam_fold(w3_oihw, bn3, w1_oihw, bn1, bnid, cpi, cpo):
    """Fold eval-mode BNs + 1x1 and identity branches into one 3x3 conv.
    Returns w_eq (9*cpi, cpo) bf16 (rows: ky-major, kx, ci) and b_eq (1, cpo) f32."""
    cout, cin = w3_oihw.shape[:2]
    s3, b3 = fold_bn(*bn3)
    s1, b1 = fold_bn(*bn1)
    w_eq = w3_oihw * s3[:, None, None, None]
    w_eq = w_eq.at[:, :, 1, 1].add(w1_oihw[:, :, 0, 0] * s1[:, None])
    b_eq = b3 + b1
    if bnid is not None:                                 # Cin == Cout, stride 1
        sid, bid = fold_bn(*bnid)
        w_eq = w_eq.at[:, :, 1, 1].add(jnp.diag(sid))
        b_eq = b_eq + bid
    w_eq = jnp.transpose(w_eq, (2, 3, 1, 0)).reshape(9, cin, cout)
    w_eq = jnp.pad(w_eq, ((0, 0), (0, cpi - cin), (0, cpo - cout)))
    w_eq = w_eq.reshape(9 * cpi, cpo).astype(jnp.bfloat16)
    b_eq = jnp.pad(b_eq, (0, cpo - cout)).reshape(1, cpo).astype(jnp.float32)
    return w_eq, b_eq


def make_params(key, cin, cout):
    ks = jax.random.split(key, 12)
    w3 = jax.random.normal(ks[0], (cout, cin, 3, 3), jnp.float32) * 0.1
    w1 = jax.random.normal(ks[1], (cout, cin, 1, 1), jnp.float32) * 0.1

    def bn(k0, k1, k2, k3, c):
        return (1.0 + 0.1 * jax.random.normal(k0, (c,), jnp.float32),
                0.1 * jax.random.normal(k1, (c,), jnp.float32),
                0.1 * jax.random.normal(k2, (c,), jnp.float32),
                jnp.abs(1.0 + 0.1 * jax.random.normal(k3, (c,), jnp.float32)))

    bn3 = bn(ks[2], ks[3], ks[4], ks[5], cout)
    bn1 = bn(ks[6], ks[7], ks[8], ks[9], cout)
    bnid = None
    if cin == cout:
        bnid = (1.0 + 0.1 * jax.random.normal(ks[10], (cin,), jnp.float32),
                0.1 * jax.random.normal(ks[11], (cin,), jnp.float32),
                jnp.zeros((cin,), jnp.float32), jnp.ones((cin,), jnp.float32))
    return w3, bn3, w1, bn1, bnid


# ---------------------------------------------------------------------------
# Pure-JAX references
# ---------------------------------------------------------------------------
def reference_folded(x_nchw, w_eq, b_eq, c_out):
    """Conv with the exact bf16-rounded folded params/inputs the kernel uses."""
    n, c_in, h, w = x_nchw.shape
    cpi = w_eq.shape[0] // 9
    cpo = w_eq.shape[1]
    x = jnp.transpose(x_nchw, (0, 2, 3, 1))
    x = jnp.pad(x, ((0, 0), (0, 0), (0, 0), (0, cpi - c_in)))
    x = x.astype(jnp.bfloat16).astype(jnp.float32)
    w_hwio = w_eq.astype(jnp.float32).reshape(3, 3, cpi, cpo)
    y = lax.conv_general_dilated(
        x, w_hwio, (1, 1), "SAME",
        dimension_numbers=("NHWC", "HWIO", "NHWC"),
        precision=lax.Precision.HIGHEST) + b_eq[0]
    y = jnp.maximum(y, 0.0).astype(jnp.bfloat16).astype(jnp.float32)[..., :c_out]
    return jnp.transpose(y, (0, 3, 1, 2))


def reference_module(x_nchw, w3, bn3, w1, bn1, bnid):
    """Full-precision three-branch reference matching the PyTorch module (eval BN)."""
    x = jnp.transpose(x_nchw, (0, 2, 3, 1))
    s3, b3 = fold_bn(*bn3)
    s1, b1 = fold_bn(*bn1)
    y = lax.conv_general_dilated(
        x, jnp.transpose(w3, (2, 3, 1, 0)), (1, 1), "SAME",
        dimension_numbers=("NHWC", "HWIO", "NHWC"),
        precision=lax.Precision.HIGHEST) * s3 + b3
    y = y + jnp.einsum("nhwc,oc->nhwo", x, w1[:, :, 0, 0],
                       precision=lax.Precision.HIGHEST) * s1 + b1
    if bnid is not None:
        sid, bid = fold_bn(*bnid)
        y = y + x * sid + bid
    return jnp.transpose(jnp.maximum(y, 0.0), (0, 3, 1, 2))


if __name__ == "__main__":
    N, C, H, W = 2, 4, 16, 16           # in_channels == out_channels, stride=1
    key = jax.random.PRNGKey(0)
    kx, kp = jax.random.split(key)
    x = jax.random.normal(kx, (N, C, H, W), jnp.float32)

    w3, bn3, w1, bn1, bnid = make_params(kp, C, C)
    cpi = _round_up(C, 128)
    cpo = _round_up(C, 128)
    w_eq, b_eq = reparam_fold(w3, bn3, w1, bn1, bnid, cpi, cpo)

    # band_h=8 -> 2 bands per image: exercises the double-buffered DMA loop.
    out = jax.block_until_ready(repvgg_block(x, w_eq, b_eq, c_out=C, band_h=8))

    # 1) Kernel vs. pure-JAX conv using the same bf16-rounded folded params
    #    (both rounded to bf16 at the output).
    ref_f = jax.block_until_ready(reference_folded(x, w_eq, b_eq, C))
    np.testing.assert_allclose(np.asarray(out), np.asarray(ref_f),
                               rtol=1e-2, atol=1e-2)
    # 2) Kernel vs. full-precision three-branch module semantics.
    ref_m = jax.block_until_ready(reference_module(x, w3, bn3, w1, bn1, bnid))
    np.testing.assert_allclose(np.asarray(out), np.asarray(ref_m),
                               rtol=5e-2, atol=5e-2)

    print("KERNEL_OK")
</pallas_src>

<mosaic_0001>
module attributes {stable_mosaic.version = 11 : i64} {
  func.func @_repvgg_kernel(%arg0: i32, %arg1: i32, %arg2: memref<2x18x32x128xbf16, #tpu.memory_space<any>>, %arg3: memref<1152x128xbf16, #tpu.memory_space<vmem>>, %arg4: memref<1x128xf32, #tpu.memory_space<vmem>>, %arg5: memref<1x256x128xbf16, #tpu.memory_space<vmem>>, %arg6: memref<2x10x32x128xbf16, #tpu.memory_space<vmem>>, %arg7: memref<2x!tpu.dma_semaphore, #tpu.memory_space<semaphore_mem>>) attributes {dimension_semantics = [#tpu.dimension_semantics<parallel>, #tpu.dimension_semantics<parallel>], iteration_bounds = array<i64: 2, 1>, scalar_prefetch = 0 : i64, scratch_operands = 2 : i64, tpu.core_type = #tpu.core_type<tc>, window_params = [{}, {transform_indices = @transform_1, window_bounds = array<i64: 1152, 128>}, {transform_indices = @transform_2, window_bounds = array<i64: 1, 128>}, {transform_indices = @transform_3, window_bounds = array<i64: 1, 256, 128>}]} {
    %c0_i32 = arith.constant 0 : i32
    %0 = tpu.assume_multiple %c0_i32, 8 : i32
    %c0_i32_0 = arith.constant 0 : i32
    %c0_i32_1 = arith.constant 0 : i32
    %c0_i32_2 = arith.constant 0 : i32
    %c0_i32_3 = arith.constant 0 : i32
    %1 = tpu.memref_slice %arg2[%arg0, %0, %c0_i32_2, %c0_i32_3] : memref<2x18x32x128xbf16, #tpu.memory_space<any>> -> memref<1x10x32x128xbf16, #tpu.memory_space<any>>
    %2 = tpu.memref_squeeze %1 : memref<1x10x32x128xbf16, #tpu.memory_space<any>> -> memref<10x32x128xbf16, #tpu.memory_space<any>>
    %c0_i32_4 = arith.constant 0 : i32
    %c0_i32_5 = arith.constant 0 : i32
    %c0_i32_6 = arith.constant 0 : i32
    %3 = tpu.memref_slice %arg6[%c0_i32_0, %c0_i32_4, %c0_i32_5, %c0_i32_6] : memref<2x10x32x128xbf16, #tpu.memory_space<vmem>> -> memref<1x10x32x128xbf16, #tpu.memory_space<vmem>>
    %4 = tpu.memref_squeeze %3 : memref<1x10x32x128xbf16, #tpu.memory_space<vmem>> -> memref<10x32x128xbf16, #tpu.memory_space<vmem>>
    %5 = tpu.memref_slice %arg7[%c0_i32_1] : memref<2x!tpu.dma_semaphore, #tpu.memory_space<semaphore_mem>> -> memref<1x!tpu.dma_semaphore, #tpu.memory_space<semaphore_mem>>
    %6 = tpu.memref_squeeze %5 : memref<1x!tpu.dma_semaphore, #tpu.memory_space<semaphore_mem>> -> memref<!tpu.dma_semaphore, #tpu.memory_space<semaphore_mem>>
    tpu.enqueue_dma source(%2 : memref<10x32x128xbf16, #tpu.memory_space<any>>) target(%4 : memref<10x32x128xbf16, #tpu.memory_space<vmem>>) target_semaphore(%6 : memref<!tpu.dma_semaphore, #tpu.memory_space<semaphore_mem>>)
    %c0_i32_7 = arith.constant 0 : i32
    %c2_i32 = arith.constant 2 : i32
    %7 = arith.addi %c0_i32_7, %c2_i32 : i32
    %c1_i32 = arith.constant 1 : i32
    scf.for %arg8 = %c0_i32_7 to %7 step %c1_i32  : i32 {
      %c1_i32_9 = arith.constant 1 : i32
      %8 = arith.muli %arg8, %c1_i32_9 : i32
      %c0_i32_10 = arith.constant 0 : i32
      %9 = arith.addi %c0_i32_10, %8 : i32
      %c2_i32_11 = arith.constant 2 : i32
      %c0_i32_12 = arith.constant 0 : i32
      %10 = arith.cmpi eq, %c2_i32_11, %c0_i32_12 : i32
      %c1_i32_13 = arith.constant 1 : i32
      %11 = arith.select %10, %c1_i32_13, %c2_i32_11 : i32
      %12 = arith.remsi %9, %11 : i32
      %c0_i32_14 = arith.constant 0 : i32
      %13 = arith.cmpi ne, %12, %c0_i32_14 : i32
      %c0_i32_15 = arith.constant 0 : i32
      %14 = arith.cmpi slt, %12, %c0_i32_15 : i32
      %c0_i32_16 = arith.constant 0 : i32
      %15 = arith.cmpi slt, %11, %c0_i32_16 : i32
      %16 = arith.xori %14, %15 : i1
      %17 = arith.andi %16, %13 : i1
      %18 = arith.addi %12, %11 : i32
      %19 = arith.select %17, %18, %12 : i32
      %c8_i32 = arith.constant 8 : i32
      %20 = arith.muli %9, %c8_i32 : i32
      %21 = tpu.assume_multiple %20, 8 : i32
      %c0_i32_17 = arith.constant 0 : i32
      %c0_i32_18 = arith.constant 0 : i32
      %22 = tpu.memref_slice %arg2[%arg0, %21, %c0_i32_17, %c0_i32_18] : memref<2x18x32x128xbf16, #tpu.memory_space<any>> -> memref<1x10x32x128xbf16, #tpu.memory_space<any>>
      %23 = tpu.memref_squeeze %22 : memref<1x10x32x128xbf16, #tpu.memory_space<any>> -> memref<10x32x128xbf16, #tpu.memory_space<any>>
      %c0_i32_19 = arith.constant 0 : i32
      %c0_i32_20 = arith.constant 0 : i32
      %c0_i32_21 = arith.constant 0 : i32
      %24 = tpu.memref_slice %arg6[%19, %c0_i32_19, %c0_i32_20, %c0_i32_21] : memref<2x10x32x128xbf16, #tpu.memory_space<vmem>> -> memref<1x10x32x128xbf16, #tpu.memory_space<vmem>>
      %25 = tpu.memref_squeeze %24 : memref<1x10x32x128xbf16, #tpu.memory_space<vmem>> -> memref<10x32x128xbf16, #tpu.memory_space<vmem>>
      %26 = tpu.memref_slice %arg7[%19] : memref<2x!tpu.dma_semaphore, #tpu.memory_space<semaphore_mem>> -> memref<1x!tpu.dma_semaphore, #tpu.memory_space<semaphore_mem>>
      %27 = tpu.memref_squeeze %26 : memref<1x!tpu.dma_semaphore, #tpu.memory_space<semaphore_mem>> -> memref<!tpu.dma_semaphore, #tpu.memory_space<semaphore_mem>>
      tpu.wait_dma2 semaphore(%27 : memref<!tpu.dma_semaphore, #tpu.memory_space<semaphore_mem>>) src(%23 : memref<10x32x128xbf16, #tpu.memory_space<any>>) dst(%25 : memref<10x32x128xbf16, #tpu.memory_space<vmem>>)
      %c1_i32_22 = arith.constant 1 : i32
      %28 = arith.addi %9, %c1_i32_22 : i32
      %c2_i32_23 = arith.constant 2 : i32
      %29 = arith.cmpi slt, %28, %c2_i32_23 : i32
      %30 = arith.extui %29 : i1 to i32
      %c0_i32_24 = arith.constant 0 : i32
      %31 = arith.cmpi ne, %30, %c0_i32_24 : i32
      scf.if %31 {
        %c1_i32_38 = arith.constant 1 : i32
        %63 = arith.addi %9, %c1_i32_38 : i32
        %c1_i32_39 = arith.constant 1 : i32
        %64 = arith.subi %c1_i32_39, %19 : i32
        %c8_i32_40 = arith.constant 8 : i32
        %65 = arith.muli %63, %c8_i32_40 : i32
        %66 = tpu.assume_multiple %65, 8 : i32
        %c0_i32_41 = arith.constant 0 : i32
        %c0_i32_42 = arith.constant 0 : i32
        %67 = tpu.memref_slice %arg2[%arg0, %66, %c0_i32_41, %c0_i32_42] : memref<2x18x32x128xbf16, #tpu.memory_space<any>> -> memref<1x10x32x128xbf16, #tpu.memory_space<any>>
        %68 = tpu.memref_squeeze %67 : memref<1x10x32x128xbf16, #tpu.memory_space<any>> -> memref<10x32x128xbf16, #tpu.memory_space<any>>
        %c0_i32_43 = arith.constant 0 : i32
        %c0_i32_44 = arith.constant 0 : i32
        %c0_i32_45 = arith.constant 0 : i32
        %69 = tpu.memref_slice %arg6[%64, %c0_i32_43, %c0_i32_44, %c0_i32_45] : memref<2x10x32x128xbf16, #tpu.memory_space<vmem>> -> memref<1x10x32x128xbf16, #tpu.memory_space<vmem>>
        %70 = tpu.memref_squeeze %69 : memref<1x10x32x128xbf16, #tpu.memory_space<vmem>> -> memref<10x32x128xbf16, #tpu.memory_space<vmem>>
        %71 = tpu.memref_slice %arg7[%64] : memref<2x!tpu.dma_semaphore, #tpu.memory_space<semaphore_mem>> -> memref<1x!tpu.dma_semaphore, #tpu.memory_space<semaphore_mem>>
        %72 = tpu.memref_squeeze %71 : memref<1x!tpu.dma_semaphore, #tpu.memory_space<semaphore_mem>> -> memref<!tpu.dma_semaphore, #tpu.memory_space<semaphore_mem>>
        tpu.enqueue_dma source(%68 : memref<10x32x128xbf16, #tpu.memory_space<any>>) target(%70 : memref<10x32x128xbf16, #tpu.memory_space<vmem>>) target_semaphore(%72 : memref<!tpu.dma_semaphore, #tpu.memory_space<semaphore_mem>>)
      } else {
      }
      %32 = arith.index_cast %19 : i32 to index
      %c0 = arith.constant 0 : index
      %c0_25 = arith.constant 0 : index
      %c0_26 = arith.constant 0 : index
      %33 = vector.load %arg6[%32, %c0, %c0_25, %c0_26] : memref<2x10x32x128xbf16, #tpu.memory_space<vmem>>, vector<1x10x32x128xbf16>
      %34 = vector.shape_cast %33 : vector<1x10x32x128xbf16> to vector<10x32x128xbf16>
      %35 = vector.extract_strided_slice %34 {offsets = [0, 0, 0], sizes = [10, 16, 128], strides = [1, 1, 1]} : vector<10x32x128xbf16> to vector<10x16x128xbf16>
      %36 = vector.extract_strided_slice %34 {offsets = [0, 1, 0], sizes = [10, 16, 128], strides = [1, 1, 1]} : vector<10x32x128xbf16> to vector<10x16x128xbf16>
      %37 = vector.extract_strided_slice %34 {offsets = [0, 2, 0], sizes = [10, 16, 128], strides = [1, 1, 1]} : vector<10x32x128xbf16> to vector<10x16x128xbf16>
      %38 = tpu.concatenate %35, %36, %37 in 2 : vector<10x16x128xbf16>, vector<10x16x128xbf16>, vector<10x16x128xbf16> -> vector<10x16x384xbf16>
      %39 = vector.shape_cast %38 : vector<10x16x384xbf16> to vector<160x384xbf16>
      %40 = vector.extract_strided_slice %39 {offsets = [0, 0], sizes = [128, 384], strides = [1, 1]} : vector<160x384xbf16> to vector<128x384xbf16>
      %c0_27 = arith.constant 0 : index
      %c0_28 = arith.constant 0 : index
      %41 = vector.load %arg3[%c0_27, %c0_28] : memref<1152x128xbf16, #tpu.memory_space<vmem>>, vector<384x128xbf16>
      %cst = arith.constant dense<0.000000e+00> : vector<128x128xf32>
      %42 = tpu.matmul %40, %41, %cst {dimension_numbers = #tpu.dot_dimension_numbers<[1], [0], [0], [1], [0, 0, 1, 1], [], []>} : vector<128x384xbf16>, vector<384x128xbf16>, vector<128x128xf32> -> vector<128x128xf32>
      %43 = vector.extract_strided_slice %39 {offsets = [16, 0], sizes = [128, 384], strides = [1, 1]} : vector<160x384xbf16> to vector<128x384xbf16>
      %c384 = arith.constant 384 : index
      %c0_29 = arith.constant 0 : index
      %44 = vector.load %arg3[%c384, %c0_29] : memref<1152x128xbf16, #tpu.memory_space<vmem>>, vector<384x128xbf16>
      %cst_30 = arith.constant dense<0.000000e+00> : vector<128x128xf32>
      %45 = tpu.matmul %43, %44, %cst_30 {dimension_numbers = #tpu.dot_dimension_numbers<[1], [0], [0], [1], [0, 0, 1, 1], [], []>} : vector<128x384xbf16>, vector<384x128xbf16>, vector<128x128xf32> -> vector<128x128xf32>
      %46 = arith.addf %42, %45 : vector<128x128xf32>
      %47 = vector.extract_strided_slice %39 {offsets = [32, 0], sizes = [128, 384], strides = [1, 1]} : vector<160x384xbf16> to vector<128x384xbf16>
      %c768 = arith.constant 768 : index
      %c0_31 = arith.constant 0 : index
      %48 = vector.load %arg3[%c768, %c0_31] : memref<1152x128xbf16, #tpu.memory_space<vmem>>, vector<384x128xbf16>
      %cst_32 = arith.constant dense<0.000000e+00> : vector<128x128xf32>
      %49 = tpu.matmul %47, %48, %cst_32 {dimension_numbers = #tpu.dot_dimension_numbers<[1], [0], [0], [1], [0, 0, 1, 1], [], []>} : vector<128x384xbf16>, vector<384x128xbf16>, vector<128x128xf32> -> vector<128x128xf32>
      %50 = arith.addf %46, %49 : vector<128x128xf32>
      %c0_33 = arith.constant 0 : index
      %c0_34 = arith.constant 0 : index
      %51 = vector.load %arg4[%c0_33, %c0_34] : memref<1x128xf32, #tpu.memory_space<vmem>>, vector<1x128xf32>
      %52 = vector.broadcast %51 : vector<1x128xf32> to vector<128x128xf32>
      %53 = arith.addf %50, %52 : vector<128x128xf32>
      %cst_35 = arith.constant 0.000000e+00 : f32
      %54 = vector.broadcast %cst_35 : f32 to vector<128x128xf32>
      %55 = arith.maximumf %53, %54 : vector<128x128xf32>
      %56 = arith.truncf %55 : vector<128x128xf32> to vector<128x128xbf16>
      %c128_i32 = arith.constant 128 : i32
      %57 = arith.muli %9, %c128_i32 : i32
      %58 = tpu.assume_multiple %57, 128 : i32
      %c0_36 = arith.constant 0 : index
      %59 = arith.index_cast %58 : i32 to index
      %c0_37 = arith.constant 0 : index
      %60 = vector.load %arg5[%c0_36, %59, %c0_37] : memref<1x256x128xbf16, #tpu.memory_space<vmem>>, vector<1x128x128xbf16>
      %61 = vector.shape_cast %60 : vector<1x128x128xbf16> to vector<128x128xbf16>
      %62 = vector.shape_cast %56 : vector<128x128xbf16> to vector<1x128x128xbf16>
      tpu.vector_store %arg5[%c0_36, %59, %c0_37], %62 {strides = array<i32>} : memref<1x256x128xbf16, #tpu.memory_space<vmem>>, vector<1x128x128xbf16>,
    }
    %c2_i32_8 = arith.constant 2 : i32
    return
  }
  func.func @transform_1(%arg0: i32, %arg1: i32) -> (i32, i32) {
    %c0_i32 = arith.constant 0 : i32
    %c0_i32_0 = arith.constant 0 : i32
    return %c0_i32, %arg1 : i32, i32
  }
  func.func @transform_2(%arg0: i32, %arg1: i32) -> (i32, i32) {
    %c0_i32 = arith.constant 0 : i32
    %c0_i32_0 = arith.constant 0 : i32
    return %c0_i32, %arg1 : i32, i32
  }
  func.func @transform_3(%arg0: i32, %arg1: i32) -> (i32, i32, i32) {
    %c0_i32 = arith.constant 0 : i32
    %c0_i32_0 = arith.constant 0 : i32
    return %arg0, %c0_i32, %arg1 : i32, i32, i32
  }
}

</mosaic_0001>

<bundles_post_ra>
// kernel: repvgg_block.1
= control target key start
LH: loop header
LB: loop body
LE: loop exit
PB: predicated region body
PF: predicated region fallthrough
CT: control target
= control target key end

     0   :  { %s2855_s12 = smov 0   ;;  %s2857_s13 = smov 0   ;;  %s3576_s0 = inlined_call_operand.vmem [shape: bf16[2,18,32,128], index: 0, kind: input, shape index: {}]   ;;  %s3577_s1 = inlined_call_operand.vmem [shape: bf16[1152,128], index: 1, kind: input, shape index: {}]   ;;  %s3578_s2 = inlined_call_operand.vmem [shape: f32[1,128], index: 2, kind: input, shape index: {}]   ;;  %s3579_s3 = inlined_call_operand.vmem [shape: bf16[2,256,128], index: 3, kind: output, shape index: {}]  }
   0x1   :  { %s2859_s14 = smov 0  }
   0x2 LB: > { %s25_s15 = sadd.s32 1, %s2825_s13  ;;  %p2126_p0 = scmp.ge.s32.totalorder %s2829_s14, 1  ;;  %s2829_s14 = sphi %s2859_s14, %s13_s14   ;;  %s2825_s13 = sphi %s2857_s13, %s3583_s13   ;;  %s2821_s12 = sphi %s2855_s12, %s3582_s12  }
   0x3   : > { %p27_p1 = scmp.ge.s32.totalorder %s25_s15, 2  ;;  %p134_p2 = scmp.lt.s32.totalorder %s2829_s14, 3 }
   0x5   : > { %s3585_s15 = smov (%p27_p1, %s25_s15), 0  ;;  %p135_p3 = pnand %p2126_p0, %p134_p2 }
   0x6   : > { %p168_p4 = scmp.lt.s32.totalorder (!%p135_p3), %s2821_s12, 1  ;;  %s2275_s16 = smul.u32 (!%p135_p3), 288, %s2821_s12 }
   0x7   : > { %138 = sbr.rel (%p135_p3) target bundleno = 455 (0x1c7), region = 28 }
   0x8   : > { %s2881_s20 = scalar_lea.vmem (!%p135_p3), %s3576_s0, %s2275_s16 }
   0xc   : > { %s169_s17 = scalar_select %p168_p4, %s2821_s12, 1  ;;  %v215_v0 = vld [vmem:[%s2881_s20] sm:$0xff]  ;;  %v217_v1 = vld [vmem:[%s2881_s20 + $0x8] sm:$0xff]  ;;  %v219_v2 = vld [vmem:[%s2881_s20 + $0x10] sm:$0xff] }
   0xd   : > { %216 = vst [vmem:[#allocation2] sm:$0xff] %v215_v0  ;;  %218 = vst [vmem:[#allocation2 + $0x8] sm:$0xff] %v217_v1  ;;  %v221_v3 = vld [vmem:[%s2881_s20 + $0x18] sm:$0xff]  ;;  %v223_v4 = vld [vmem:[%s2881_s20 + $0x20] sm:$0xff] }
   0xe   : > { %s2274_s21 = sshll.u32 %s169_s17, 7  ;;  %220 = vst [vmem:[#allocation2 + $0x10] sm:$0xff] %v219_v2  ;;  %v225_v5 = vld [vmem:[%s2881_s20 + $0x28] sm:$0xff]  ;;  %222 = vst [vmem:[#allocation2 + $0x18] sm:$0xff] %v221_v3  ;;  %v227_v6 = vld [vmem:[%s2881_s20 + $0x30] sm:$0xff] }
   0xf   : > { %s2889_s24 = scalar_lea.vmem %s3579_s3, %s2274_s21  ;;  %224 = vst [vmem:[#allocation2 + $0x20] sm:$0xff] %v223_v4  ;;  %226 = vst [vmem:[#allocation2 + $0x28] sm:$0xff] %v225_v5  ;;  %v229_v7 = vld [vmem:[%s2881_s20 + $0x38] sm:$0xff]  ;;  %v231_v8 = vld [vmem:[%s2881_s20 + $0x40] sm:$0xff] }
  0x10   : > { %228 = vst [vmem:[#allocation2 + $0x30] sm:$0xff] %v227_v6  ;;  %230 = vst [vmem:[#allocation2 + $0x38] sm:$0xff] %v229_v7  ;;  %v233_v9 = vld [vmem:[%s2881_s20 + $0x48] sm:$0xff]  ;;  %v235_v10 = vld [vmem:[%s2881_s20 + $0x50] sm:$0xff] }
  0x11   : > { %232 = vst [vmem:[#allocation2 + $0x40] sm:$0xff] %v231_v8  ;;  %v237_v11 = vld [vmem:[%s2881_s20 + $0x58] sm:$0xff]  ;;  %234 = vst [vmem:[#allocation2 + $0x48] sm:$0xff] %v233_v9  ;;  %v239_v12 = vld [vmem:[%s2881_s20 + $0x60] sm:$0xff] }
  0x12   : > { %236 = vst [vmem:[#allocation2 + $0x50] sm:$0xff] %v235_v10  ;;  %238 = vst [vmem:[#allocation2 + $0x58] sm:$0xff] %v237_v11  ;;  %v241_v13 = vld [vmem:[%s2881_s20 + $0x68] sm:$0xff]  ;;  %v243_v14 = vld [vmem:[%s2881_s20 + $0x70] sm:$0xff] }
  0x13   : > { %240 = vst [vmem:[#allocation2 + $0x60] sm:$0xff] %v239_v12  ;;  %242 = vst [vmem:[#allocation2 + $0x68] sm:$0xff] %v241_v13  ;;  %v245_v15 = vld [vmem:[%s2881_s20 + $0x78] sm:$0xff]  ;;  %v247_v16 = vld [vmem:[%s2881_s20 + $0x80] sm:$0xff] }
  0x14   : > { %244 = vst [vmem:[#allocation2 + $0x70] sm:$0xff] %v243_v14  ;;  %v249_v17 = vld [vmem:[%s2881_s20 + $0x88] sm:$0xff]  ;;  %246 = vst [vmem:[#allocation2 + $0x78] sm:$0xff] %v245_v15  ;;  %v251_v18 = vld [vmem:[%s2881_s20 + $0x90] sm:$0xff] }
  0x15   : > { %248 = vst [vmem:[#allocation2 + $0x80] sm:$0xff] %v247_v16  ;;  %250 = vst [vmem:[#allocation2 + $0x88] sm:$0xff] %v249_v17  ;;  %v253_v19 = vld [vmem:[%s2881_s20 + $0x98] sm:$0xff] }
  0x16   : > { %252 = vst [vmem:[#allocation2 + $0x90] sm:$0xff] %v251_v18  ;;  %254 = vst [vmem:[#allocation2 + $0x98] sm:$0xff] %v253_v19 }
  0x17   : > { %262 = vsyncadd [#allocation3], 2560  ;;  %s2908_s25 = smov 0  }
  0x18 LB: >> { %p269_p5 = scmp.lt.s32.totalorder %s2833_s25, 0  ;;  %s270_s26 = ssub.s32 0, %s2833_s25  ;;  %s2833_s25 = sphi %s2908_s25, %s3581_s25  }
  0x19   : >> { %s2130_s27 = smin.u32 %s2833_s25, %s270_s26 }
  0x1a   : >> { %s272_s28 = sand.u32 1, %s2130_s27  }
  0x1b   : >> { %s273_s29 = ssub.s32 0, %s272_s28 }
  0x1c   : >> { %s3587_s29 = smov (!%p269_p5, %s273_s29), %s272_s28 }
  0x1d   : >> { %p2132_p6 = scmp.lt.s32.totalorder %s3587_s29, 0  ;;  %s279_s30 = sadd.s32 2, %s3587_s29 }
  0x1f   : >> { %s3589_s30 = smov (!%p2132_p6, %s279_s30), %s3587_s29 }
  0x20   : >> { %s2276_s4 = smul.u32 160, %s3589_s30  ;;  %s285_s6 = scalar_lea.sflag [#allocation3], %s3589_s30 }
  0x22   : >> { %s2919_s5 = scalar_lea.vmem [#allocation2], %s2276_s4 }
  0x23   : >> { %2817 = dma.done.wait %s285_s6, 2560 }
  0x24   : >> { %2818 = vsyncadd %s285_s6, 4294964736  ;;  %s291_s7 = sadd.s32 1, %s2833_s25  }
  0x25   : >> { %p2925_p7 = scmp.ge.s32.totalorder %s291_s7, 2 }
  0x26   : >> { %s296_s9 = ssub.s32 (!%p2925_p7), 1, %s3589_s30  ;;  %s2135_s10 = sshll.u32 (!%p2925_p7), %s2833_s25, 5 }
  0x27   : >> { %295 = sbr.rel (%p2925_p7) target bundleno = 57 (0x39), region = 73  ;;  %s305_s23 = scalar_lea.sflag (!%p2925_p7), [#allocation3], %s296_s9 }
  0x28   : >> { %s2041_s11 = smul.u32 (!%p2925_p7), 72, %s2821_s12 }
  0x29   : >> { %s2277_s16 = smul.u32 (!%p2925_p7), 160, %s296_s9 }
  0x2a   : >> { %s2042_s17 = sadd.s32 (!%p2925_p7), %s2135_s10, %s2041_s11 }
  0x2b   : >> { %s2136_s18 = sshll.u32 (!%p2925_p7), %s2042_s17, 2  ;;  %s2944_s22 = scalar_lea.vmem (!%p2925_p7), [#allocation2], %s2277_s16 }
  0x2c   : >> { %s2939_s21 = scalar_lea.vmem %s3576_s0, %s2136_s18 }
  0x2d   : >> { %v2138_v20 = vld [vmem:[%s2939_s21 + $0x80] sm:$0xff]  ;;  %v2139_v21 = vld [vmem:[%s2939_s21 + $0x88] sm:$0xff]  ;;  %v2140_v22 = vld [vmem:[%s2939_s21 + $0x90] sm:$0xff] }
  0x2e   : >> { %340 = vst [vmem:[%s2944_s22] sm:$0xff] %v2138_v20  ;;  %342 = vst [vmem:[%s2944_s22 + $0x8] sm:$0xff] %v2139_v21  ;;  %v2141_v23 = vld [vmem:[%s2939_s21 + $0x98] sm:$0xff]  ;;  %v2142_v24 = vld [vmem:[%s2939_s21 + $0xa0] sm:$0xff] }
  0x2f   : >> { %344 = vst [vmem:[%s2944_s22 + $0x10] sm:$0xff] %v2140_v22  ;;  %v2143_v25 = vld [vmem:[%s2939_s21 + $0xa8] sm:$0xff]  ;;  %346 = vst [vmem:[%s2944_s22 + $0x18] sm:$0xff] %v2141_v23  ;;  %v2144_v26 = vld [vmem:[%s2939_s21 + $0xb0] sm:$0xff] }
  0x30   : >> { %348 = vst [vmem:[%s2944_s22 + $0x20] sm:$0xff] %v2142_v24  ;;  %350 = vst [vmem:[%s2944_s22 + $0x28] sm:$0xff] %v2143_v25  ;;  %v2145_v27 = vld [vmem:[%s2939_s21 + $0xb8] sm:$0xff]  ;;  %v2146_v28 = vld [vmem:[%s2939_s21 + $0xc0] sm:$0xff] }
  0x31   : >> { %352 = vst [vmem:[%s2944_s22 + $0x30] sm:$0xff] %v2144_v26  ;;  %354 = vst [vmem:[%s2944_s22 + $0x38] sm:$0xff] %v2145_v27  ;;  %v2147_v29 = vld [vmem:[%s2939_s21 + $0xc8] sm:$0xff]  ;;  %v2148_v30 = vld [vmem:[%s2939_s21 + $0xd0] sm:$0xff] }
  0x32   : >> { %356 = vst [vmem:[%s2944_s22 + $0x40] sm:$0xff] %v2146_v28  ;;  %v2149_v31 = vld [vmem:[%s2939_s21 + $0xd8] sm:$0xff]  ;;  %358 = vst [vmem:[%s2944_s22 + $0x48] sm:$0xff] %v2147_v29  ;;  %v2150_v32 = vld [vmem:[%s2939_s21 + $0xe0] sm:$0xff] }
  0x33   : >> { %360 = vst [vmem:[%s2944_s22 + $0x50] sm:$0xff] %v2148_v30  ;;  %362 = vst [vmem:[%s2944_s22 + $0x58] sm:$0xff] %v2149_v31  ;;  %v2151_v33 = vld [vmem:[%s2939_s21 + $0xe8] sm:$0xff]  ;;  %v2152_v34 = vld [vmem:[%s2939_s21 + $0xf0] sm:$0xff] }
  0x34   : >> { %364 = vst [vmem:[%s2944_s22 + $0x60] sm:$0xff] %v2150_v32  ;;  %366 = vst [vmem:[%s2944_s22 + $0x68] sm:$0xff] %v2151_v33  ;;  %v2153_v35 = vld [vmem:[%s2939_s21 + $0xf8] sm:$0xff]  ;;  %v2154_v36 = vld [vmem:[%s2939_s21 + $0x100] sm:$0xff] }
  0x35   : >> { %368 = vst [vmem:[%s2944_s22 + $0x70] sm:$0xff] %v2152_v34  ;;  %v2155_v37 = vld [vmem:[%s2939_s21 + $0x108] sm:$0xff]  ;;  %370 = vst [vmem:[%s2944_s22 + $0x78] sm:$0xff] %v2153_v35  ;;  %v2156_v38 = vld [vmem:[%s2939_s21 + $0x110] sm:$0xff] }
  0x36   : >> { %372 = vst [vmem:[%s2944_s22 + $0x80] sm:$0xff] %v2154_v36  ;;  %374 = vst [vmem:[%s2944_s22 + $0x88] sm:$0xff] %v2155_v37  ;;  %v2157_v39 = vld [vmem:[%s2939_s21 + $0x118] sm:$0xff] }
  0x37   : >> { %376 = vst [vmem:[%s2944_s22 + $0x90] sm:$0xff] %v2156_v38  ;;  %378 = vst [vmem:[%s2944_s22 + $0x98] sm:$0xff] %v2157_v39 }
  0x38   : >> { %386 = vsyncadd %s305_s23, 2560 }
  0x39 PF: >> { %v2709_v40 = vld [vmem:[%s3577_s1 + $0x138] sm:$0xff]   ;;  %v2712_v43 = vld [vmem:[%s3577_s1 + $0x130] sm:$0xff]   ;;  %v2715_v46 = vld [vmem:[%s3577_s1 + $0x128] sm:$0xff]   ;;  %vm638_vm0 = vcmask 1046528   ;;  %vm507_vm1 = vsmask.f32 7424 }
  0x3a   : >> { %v2710_v41 = vld [vmem:[%s3577_s1 + $0x178] sm:$0xff]   ;;  %2341 = vmatprep.subr.bf16.mxu0 %v2709_v40  ;;  %v2713_v44 = vld [vmem:[%s3577_s1 + $0x170] sm:$0xff]   ;;  %v2716_v47 = vld [vmem:[%s3577_s1 + $0x168] sm:$0xff]  }
  0x3b   : >> { %v2711_v42 = vld [vmem:[%s3577_s1 + $0xf8] sm:$0xff]   ;;  %2581 = vmatprep.subr.bf16.mxu1 %v2710_v41  ;;  %v2714_v45 = vld [vmem:[%s3577_s1 + $0xf0] sm:$0xff]   ;;  %v2717_v48 = vld [vmem:[%s3577_s1 + $0xe8] sm:$0xff]  }
  0x3c   : >> { %2342 = vmatpush3.bf16.msra.mxu0 %v2711_v42  ;;  %2582 = vmatpush3.bf16.msra.mxu1 %v2710_v41  ;;  %v2718_v49 = vld [vmem:[%s3577_s1 + $0x120] sm:$0xff]   ;;  %v2721_v52 = vld [vmem:[%s3577_s1 + $0x118] sm:$0xff]   ;;  %v2724_v55 = vld [vmem:[%s3577_s1 + $0x110] sm:$0xff]  }
  0x3d   : >> { %2343 = vmatprep.subr.bf16.mxu0 %v2712_v43  ;;  %2583 = vmatprep.subr.bf16.mxu1 %v2713_v44  ;;  %v2719_v50 = vld [vmem:[%s3577_s1 + $0x160] sm:$0xff]   ;;  %v2722_v53 = vld [vmem:[%s3577_s1 + $0x158] sm:$0xff]   ;;  %v2725_v56 = vld [vmem:[%s3577_s1 + $0x150] sm:$0xff]  }
  0x3e   : >> { %v2720_v51 = vld [vmem:[%s3577_s1 + $0xe0] sm:$0xff]   ;;  %v2723_v54 = vld [vmem:[%s3577_s1 + $0xd8] sm:$0xff]   ;;  %v2726_v57 = vld [vmem:[%s3577_s1 + $0xd0] sm:$0xff]  }
  0x3f   : >> { %v2727_v58 = vld [vmem:[%s3577_s1 + $0x108] sm:$0xff]   ;;  %v2730_v61 = vld [vmem:[%s3577_s1 + $0x100] sm:$0xff]   ;;  %v3055_v63 = vld [vmem:[%s2919_s5 + $0x10] sm:$0xff]  }
  0x40   : >> { %2344 = vmatpush3.bf16.msra.mxu0 %v2714_v45  ;;  %2584 = vmatpush3.bf16.msra.mxu1 %v2713_v44  ;;  %v2728_v59 = vld [vmem:[%s3577_s1 + $0x148] sm:$0xff]   ;;  %v2731_v62 = vld [vmem:[%s3577_s1 + $0x140] sm:$0xff]   ;;  %v2734_v0 = vld [vmem:[%s2919_s5 + $0x18] ss:$0 sps:$4 sm:$0xff]   ;;  %v521_v3 = vshrl.u32 %v3055_v63, 16  ;;  %v523_v4 = vshll.u32 %v3055_v63, 16 }
  0x41   : >> { %2345 = vmatprep.subr.bf16.mxu0 %v2715_v46  ;;  %2585 = vmatprep.subr.bf16.mxu1 %v2716_v47  ;;  %v2729_v60 = vld [vmem:[%s3577_s1 + $0xc8] sm:$0xff]   ;;  %v3059_v1 = vld [vmem:[%s2919_s5 + $0x20] sm:$0xff]   ;;  %v528_v5 = vshll.u32 %v2734_v0, 16  ;;  %v642_v6 = vrot.slane %v3055_v63, 1  ;;  %v643_v8 = vrot.slane %v2734_v0, 1  ;;  %v2737_v13 = vld [vmem:[%s3577_s1 + $0x78] sm:$0xff]  }
  0x42   : >> { %v2732_v2 = vld [vmem:[%s3577_s1 + $0xc0] sm:$0xff]   ;;  %v2736_v7 = vld [vmem:[%s2919_s5 + $0x28] ss:$0 sps:$4 sm:$0xff]   ;;  %v645_v9 = vrot.slane %v3059_v1, 1  ;;  %v525_v10 = vrot.slane %v523_v4, 1  ;;  %v2738_v15 = vld [vmem:[%s3577_s1 + $0xb8] sm:$0xff]  }
  0x43   : >> { %v530_v11 = vrot.slane %v528_v5, 1  ;;  %v646_v12 = vrot.slane %v2736_v7, 1  ;;  %v3073_v14 = vsel %vm638_vm0, %v642_v6, %v643_v8  ;;  %v533_v17 = vshrl.u32 %v3059_v1, 16  ;;  %v2739_v20 = vld [vmem:[%s3577_s1 + $0x38] sm:$0xff]   ;;  %v2740_v23 = vld [vmem:[%s3577_s1 + $0x70] sm:$0xff]   ;;  %v3105_v31 = vld [vmem:[%s2919_s5 + $0x40] sm:$0xff]  }
  0x44   : >> { %2346 = vmatpush3.bf16.msra.mxu0 %v2717_v48  ;;  %2586 = vmatpush3.bf16.msra.mxu1 %v2716_v47  ;;  %v526_v16 = vor.u32 %v525_v10, %v521_v3  ;;  %v535_v18 = vshll.u32 %v3059_v1, 16  ;;  %v540_v21 = vshll.u32 %v2736_v7, 16  ;;  %v2741_v25 = vld [vmem:[%s3577_s1 + $0x30] sm:$0xff]   ;;  %v2743_v29 = vld [vmem:[%s2919_s5 + $0x38] ss:$0 sps:$4 sm:$0xff]   ;;  %v2746_v35 = vld [vmem:[%s3577_s1 + $0x68] sm:$0xff]  }
  0x45   : >> { %2347 = vmatprep.subr.bf16.mxu0 %v2718_v49  ;;  %2587 = vmatprep.subr.bf16.mxu1 %v2719_v50  ;;  %v3082_v19 = vsel %vm638_vm0, %v645_v9, %v646_v12  ;;  %v3098_v27 = vld [vmem:[%s2919_s5 + $0x30] sm:$0xff]   ;;  %v2745_v32 = vld [vmem:[%s2919_s5 + $0x48] ss:$0 sps:$4 sm:$0xff]   ;;  %v649_v34 = vrot.slane %v2743_v29, 1  ;;  %v651_v36 = vrot.slane %v3105_v31, 1  ;;  %v2749_v44 = vld [vmem:[%s3577_s1 + $0x60] sm:$0xff]  }
  0x46   : >> { %2597 = vmatprep.mubr.bf16.mxu1 %v3073_v14  ;;  %v3088_v22 = vsel %vm507_vm1, %v526_v16, %v530_v11  ;;  %v537_v24 = vrot.slane %v535_v18, 1  ;;  %v542_v26 = vrot.slane %v540_v21, 1  ;;  %v648_v30 = vrot.slane %v3098_v27, 1  ;;  %v2747_v39 = vld [vmem:[%s3577_s1 + $0xb0] sm:$0xff]   ;;  %v2748_v42 = vld [vmem:[%s3577_s1 + $0x28] sm:$0xff]   ;;  %v2750_v46 = vld [vmem:[%s3577_s1 + $0x20] sm:$0xff]  }
  0x47   : >> { %951 = vmatprep.mubr.bf16.mxu0 %v3088_v22  ;;  %v652_v37 = vrot.slane %v2745_v32, 1  ;;  %v545_v40 = vshrl.u32 %v3098_v27, 16  ;;  %v547_v43 = vshll.u32 %v3098_v27, 16  ;;  %v552_v45 = vshll.u32 %v2743_v29, 16  ;;  %v3140_v49 = vld [vmem:[%s2919_s5 + $0x50] sm:$0xff]   ;;  %v3193_v12 = vld [vmem:[%s2919_s5 + $0x80] sm:$0xff]  }
  0x48   : >> { %2348 = vmatpush3.bf16.msra.mxu0 %v2720_v51  ;;  %2588 = vmatpush3.bf16.msra.mxu1 %v2719_v50  ;;  %v538_v28 = vor.u32 %v537_v24, %v533_v17  ;;  %v3117_v38 = vsel %vm638_vm0, %v648_v30, %v649_v34  ;;  %v3143_v50 = vld [vmem:[%s2919_s5 + $0x58] ss:$0 sps:$4 sm:$0xff]   ;;  %v557_v3 = vshrl.u32 %v3105_v31, 16  ;;  %v2759_v4 = vld [vmem:[%s3577_s1 + $0x10] sm:$0xff]   ;;  %v559_v5 = vshll.u32 %v3105_v31, 16  ;;  %v2764_v18 = vld [vmem:[%s3577_s1 + $0x48] sm:$0xff]  }
  0x49   : >> { %2349 = vmatprep.subr.bf16.mxu0 %v2721_v52  ;;  %2589 = vmatprep.subr.bf16.mxu1 %v2722_v53  ;;  %v3125_v41 = vsel %vm638_vm0, %v651_v36, %v652_v37  ;;  %v549_v47 = vrot.slane %v547_v43, 1  ;;  %v554_v48 = vrot.slane %v552_v45, 1  ;;  %v654_v52 = vrot.slane %v3140_v49, 1  ;;  %v3184_v7 = vld [vmem:[%s2919_s5 + $0x70] sm:$0xff]   ;;  %v3189_v10 = vld [vmem:[%s2919_s5 + $0x78] ss:$0 sps:$4 sm:$0xff]  }
  0x4a   : >> { %v3109_v33 = vsel %vm507_vm1, %v538_v28, %v542_v26  ;;  %v564_v6 = vshll.u32 %v2745_v32, 16  ;;  %v561_v8 = vrot.slane %v559_v5, 1  ;;  %v660_v11 = vrot.slane %v3184_v7, 1  ;;  %v3197_v16 = vld [vmem:[%s2919_s5 + $0x88] ss:$0 sps:$4 sm:$0xff]   ;;  %v2767_v30 = vld [vmem:[%s3577_s1 + $0x40] sm:$0xff]  }
  0x4b   : >> { %v550_v51 = vor.u32 %v549_v47, %v545_v40  ;;  %v663_v17 = vrot.slane %v3193_v12, 1  ;;  %v664_v24 = vrot.slane %v3197_v16, 1  ;;  %v2766_v26 = vld [vmem:[%s3577_s1 + $0x8] sm:$0xff]   ;;  %v571_v28 = vshll.u32 %v3140_v49, 16  ;;  %v2768_v34 = vld [vmem:[%s3577_s1] sm:$0xff]   ;;  %v2772_v47 = vld [vmem:[%s3577_s1 + $0x90] sm:$0xff]  }
  0x4c   : >> { %2350 = vmatpush3.bf16.msra.mxu0 %v2723_v54  ;;  %2590 = vmatpush3.bf16.msra.mxu1 %v2722_v53  ;;  %v655_v53 = vrot.slane %v3143_v50, 1  ;;  %v3148_v54 = vld [vmem:[%s2919_s5 + $0x60] sm:$0xff]   ;;  %v566_v9 = vrot.slane %v564_v6, 1  ;;  %v576_v32 = vshll.u32 %v3143_v50, 16  ;;  %v3236_v40 = vld [vmem:[%s2919_s5 + $0x8] ss:$0 sps:$4 sm:$0xff]  }
  0x4d   : >> { %2351 = vmatprep.subr.bf16.mxu0 %v2724_v55  ;;  %2591 = vmatprep.subr.bf16.mxu1 %v2725_v56  ;;  %v3151_v55 = vld [vmem:[%s2919_s5 + $0x68] ss:$0 sps:$4 sm:$0xff]   ;;  %v3221_v29 = vsel %vm638_vm0, %v663_v17, %v664_v24  ;;  %v3233_v37 = vld [vmem:[%s2919_s5] sm:$0xff]   ;;  %v581_v45 = vshrl.u32 %v3148_v54, 16  ;;  %v516_v50 = vshll.u32 %v3236_v40, 16  ;;  %v612_v17 = vshll.u32 %v3197_v16, 16 }
  0x4e   : >> { %v578_v36 = vrot.slane %v576_v32, 1  ;;  %v511_v43 = vshll.u32 %v3233_v37, 16  ;;  %v2780_v24 = vld [vmem:[%s3577_s1 + $0x230] sm:$0xff]   ;;  %v2783_v16 = vld [vmem:[%s3577_s1 + $0x228] sm:$0xff]   ;;  %v2789_v32 = vld [vmem:[%s3577_s1 + $0x218] sm:$0xff]  }
  0x50   : >> { %2352 = vmatpush3.bf16.msra.mxu0 %v2726_v57  ;;  %2592 = vmatpush3.bf16.msra.mxu1 %v2725_v56  ;;  %v2755_v56 = vld [vmem:[%s3577_s1 + $0x58] sm:$0xff]   ;;  %v3157_v57 = vsel %vm507_vm1, %v550_v51, %v554_v48  ;;  %v588_v51 = vshll.u32 %v3151_v55, 16 }
  0x51   : >> { %2353 = vmatprep.subr.bf16.mxu0 %v2727_v58  ;;  %2593 = vmatprep.subr.bf16.mxu1 %v2728_v59  ;;  %v3161_v58 = vsel %vm638_vm0, %v654_v52, %v655_v53  ;;  %v513_v52 = vrot.slane %v511_v43, 1  ;;  %v2779_v43 = vld [vmem:[%s3577_s1 + $0x1b0] sm:$0xff]  }
  0x54   : >> { %2354 = vmatpush3.bf16.msra.mxu0 %v2729_v60  ;;  %2594 = vmatpush3.bf16.msra.mxu1 %v2728_v59  ;;  %v657_v59 = vrot.slane %v3148_v54, 1  ;;  %v658_v60 = vrot.slane %v3151_v55, 1  ;;  %v2773_v55 = vld [vmem:[%s3577_s1 + $0x88] sm:$0xff]  }
  0x55   : >> { %2355 = vmatprep.subr.bf16.mxu0 %v2730_v61  ;;  %2595 = vmatprep.subr.bf16.mxu1 %v2731_v62  ;;  %v2756_v61 = vld [vmem:[%s3577_s1 + $0xa8] sm:$0xff]  }
  0x56   : >> { %v3173_v0 = vsel %vm638_vm0, %v657_v59, %v658_v60  ;;  %v518_v59 = vrot.slane %v516_v50, 1  ;;  %v590_v60 = vrot.slane %v588_v51, 1  ;;  %v2788_v50 = vld [vmem:[%s3577_s1 + $0x198] sm:$0xff]   ;;  %v2790_v51 = vld [vmem:[%s3577_s1 + $0x1d0] sm:$0xff]  }
  0x58   : >> { %2356 = vmatpush3.bf16.msra.mxu0 %v2732_v2  ;;  %2596 = vmatpush3.bf16.msra.mxu1 %v2731_v62  ;;  %v2757_v62 = vld [vmem:[%s3577_s1 + $0x18] sm:$0xff]   ;;  %v2758_v2 = vld [vmem:[%s3577_s1 + $0x50] sm:$0xff]  }
  0x59   : >> { %2421 = vmatprep.subr.bf16.mxu1 %v2737_v13  ;;  %2613 = vmatprep.subr.bf16.mxu0 %v2738_v15  ;;  %v562_v13 = vor.u32 %v561_v8, %v557_v3 }
  0x5b   : >> { %952 = vmatmul.mubr.bf16.vlgmr.msra.gmra.mxu0 %v3055_v63  ;;  %2598 = vmatmul.mubr.bf16.vlgmr.msra.gmra.mxu1 %v3082_v19  ;;  %v3205_v21 = vsel %vm507_vm1, %v562_v13, %v566_v9  ;;  %v2774_v13 = vld [vmem:[%s3577_s1 + $0x80] sm:$0xff]  }
  0x5c   : >> { %2422 = vmatpush3.bf16.msra.mxu1 %v2739_v20  ;;  %2614 = vmatpush3.bf16.msra.mxu0 %v2738_v15  ;;  %v661_v15 = vrot.slane %v3189_v10, 1  ;;  %v569_v20 = vshrl.u32 %v3140_v49, 16 }
  0x5d   : >> { %2423 = vmatprep.subr.bf16.mxu1 %v2740_v23  ;;  %959 = vmatprep.mubr.bf16.mxu0 %v3109_v33 }
  0x5e   : >> { %2601 = vmatprep.mubr.bf16.mxu1 %v3117_v38  ;;  %2615 = vmatprep.subr.bf16.mxu0 %v2747_v39  ;;  %v3208_v23 = vsel %vm638_vm0, %v660_v11, %v661_v15  ;;  %v2777_v11 = vld [vmem:[%s3577_s1 + $0x238] sm:$0xff]   ;;  %v605_v15 = vshrl.u32 %v3193_v12, 16 }
  0x60   : >> { %2424 = vmatpush3.bf16.msra.mxu1 %v2741_v25  ;;  %2616 = vmatpush3.bf16.msra.mxu0 %v2747_v39  ;;  %v2765_v25 = vld [vmem:[%s3577_s1 + $0xa0] sm:$0xff]  }
  0x61   : >> { %2425 = vmatprep.subr.bf16.mxu1 %v2746_v35  ;;  %2617 = vmatprep.subr.bf16.mxu0 %v2756_v61  ;;  %v573_v35 = vrot.slane %v571_v28, 1  ;;  %v2786_v28 = vld [vmem:[%s3577_s1 + $0x220] sm:$0xff]  }
  0x63   : >> { %960 = vmatmul.mubr.bf16.gmra.mxu0 %v3059_v1  ;;  %2602 = vmatmul.mubr.bf16.gmra.mxu1 %v3125_v41  ;;  %v574_v39 = vor.u32 %v573_v35, %v569_v20  ;;  %v2792_v35 = vld [vmem:[%s3577_s1 + $0x210] sm:$0xff]  }
  0x64   : >> { %2426 = vmatpush3.bf16.msra.mxu1 %v2748_v42  ;;  %967 = vmatprep.mubr.bf16.mxu0 %v3157_v57  ;;  %v509_v42 = vshrl.u32 %v3233_v37, 16 }
  0x65   : >> { %2427 = vmatprep.subr.bf16.mxu1 %v2749_v44  ;;  %2605 = vmatprep.mubr.bf16.mxu1 %v3161_v58  ;;  %v2771_v44 = vld [vmem:[%s3577_s1 + $0x98] sm:$0xff]   ;;  %v3249_v48 = vsel %vm507_vm1, %v574_v39, %v578_v36  ;;  %v2798_v39 = vld [vmem:[%s3577_s1 + $0x200] sm:$0xff]  }
  0x66   : >> { %2618 = vmatpush3.bf16.msra.mxu0 %v2756_v61  ;;  %v593_v61 = vshrl.u32 %v3184_v7, 16 }
  0x67   : >> { %2619 = vmatprep.subr.bf16.mxu0 %v2765_v25 }
  0x68   : >> { %2428 = vmatpush3.bf16.msra.mxu1 %v2750_v46  ;;  %v583_v46 = vshll.u32 %v3148_v54, 16 }
  0x69   : >> { %2429 = vmatprep.subr.bf16.mxu1 %v2755_v56  ;;  %v595_v56 = vshll.u32 %v3184_v7, 16 }
  0x6a   : >> { %2620 = vmatpush3.bf16.msra.mxu0 %v2765_v25  ;;  %v585_v53 = vrot.slane %v583_v46, 1  ;;  %v2785_v46 = vld [vmem:[%s3577_s1 + $0x1a0] sm:$0xff]  }
  0x6b   : >> { %968 = vmatmul.mubr.bf16.gmra.mxu0 %v3098_v27  ;;  %2606 = vmatmul.mubr.bf16.gmra.mxu1 %v3173_v0 }
  0x6c   : >> { %2430 = vmatpush3.bf16.msra.mxu1 %v2757_v62  ;;  %975 = vmatprep.mubr.bf16.mxu0 %v3205_v21  ;;  %v600_v62 = vshll.u32 %v3189_v10, 16  ;;  %v586_v3 = vor.u32 %v585_v53, %v581_v45  ;;  %v607_v10 = vshll.u32 %v3193_v12, 16  ;;  %v2784_v45 = vld [vmem:[%s3577_s1 + $0x1e0] sm:$0xff]   ;;  %v2793_v53 = vld [vmem:[%s3577_s1 + $0x1c8] sm:$0xff]  }
  0x6d   : >> { %2431 = vmatprep.subr.bf16.mxu1 %v2758_v2  ;;  %2609 = vmatprep.mubr.bf16.mxu1 %v3208_v23  ;;  %v514_v2 = vor.u32 %v513_v52, %v509_v42  ;;  %v2778_v42 = vld [vmem:[%s3577_s1 + $0x1f0] sm:$0xff]  }
  0x6e   : >> { %2621 = vmatprep.subr.bf16.mxu0 %v2771_v44  ;;  %v3263_v6 = vsel %vm507_vm1, %v586_v3, %v590_v60  ;;  %v602_v9 = vrot.slane %v600_v62, 1  ;;  %v609_v20 = vrot.slane %v607_v10, 1  ;;  %v2791_v52 = vld [vmem:[%s3577_s1 + $0x190] sm:$0xff]   ;;  %v2797_v60 = vld [vmem:[%s3577_s1 + $0x180] sm:$0xff]  }
  0x6f   : >> { %2622 = vmatpush3.bf16.msra.mxu0 %v2771_v44  ;;  %v519_v5 = vsel %vm507_vm1, %v514_v2, %v518_v59  ;;  %v2781_v44 = vld [vmem:[%s3577_s1 + $0x1e8] sm:$0xff]   ;;  %v2796_v59 = vld [vmem:[%s3577_s1 + $0x1c0] sm:$0xff]  }
  0x70   : >> { %2432 = vmatpush3.bf16.msra.mxu1 %v2759_v4  ;;  %v597_v4 = vrot.slane %v595_v56, 1  ;;  %2623 = vmatprep.subr.bf16.mxu0 %v2772_v47  ;;  %v610_v25 = vor.u32 %v609_v20, %v605_v15  ;;  %v2794_v56 = vld [vmem:[%s3577_s1 + $0x188] sm:$0xff]  }
  0x71   : >> { %2433 = vmatprep.subr.bf16.mxu1 %v2764_v18 }
  0x72   : >> { %v598_v8 = vor.u32 %v597_v4, %v593_v61 }
  0x73   : >> { %976 = vmatmul.mubr.bf16.gmra.mxu0 %v3105_v31  ;;  %2610 = vmatmul.mubr.bf16.gmra.mxu1 %v3221_v29 }
  0x74   : >> { %2434 = vmatpush3.bf16.msra.mxu1 %v2766_v26  ;;  %983 = vmatprep.mubr.bf16.mxu0 %v3249_v48  ;;  %v3278_v18 = vsel %vm507_vm1, %v598_v8, %v602_v9  ;;  %v614_v26 = vrot.slane %v612_v17, 1 }
  0x75   : >> { %2435 = vmatprep.subr.bf16.mxu1 %v2767_v30  ;;  %1289 = vmatprep.mubr.bf16.mxu1 %v519_v5 }
  0x76   : >> { %2624 = vmatpush3.bf16.msra.mxu0 %v2772_v47  ;;  %v3297_v30 = vsel %vm507_vm1, %v610_v25, %v614_v26  ;;  %v2787_v47 = vld [vmem:[%s3577_s1 + $0x1d8] sm:$0xff]  }
  0x77   : >> { %2625 = vmatprep.subr.bf16.mxu0 %v2773_v55 }
  0x78   : >> { %2436 = vmatpush3.bf16.msra.mxu1 %v2768_v34  ;;  %v640_v34 = vrot.slane %v3236_v40, 1  ;;  %v2776_v40 = vld [vmem:[%s3577_s1 + $0x1b8] sm:$0xff]  }
  0x79   : >> { %2645 = vmatprep.subr.bf16.mxu1 %v2777_v11 }
  0x7a   : >> { %2626 = vmatpush3.bf16.msra.mxu0 %v2773_v55 }
  0x7b   : >> { %984 = vmatmul.mubr.bf16.gmra.mxu0 %v3140_v49  ;;  %1290 = vmatmul.mubr.bf16.vlgmr.msra.gmra.mxu1 %v3233_v37 }
  0x7c   : >> { %991 = vmatprep.mubr.bf16.mxu0 %v3263_v6  ;;  %1297 = vmatprep.mubr.bf16.mxu1 %v3088_v22  ;;  %v2775_v22 = vld [vmem:[%s3577_s1 + $0x1f8] sm:$0xff]  }
  0x7d   : >> { %2646 = vmatpush3.bf16.msra.mxu1 %v2777_v11  ;;  %2627 = vmatprep.subr.bf16.mxu0 %v2774_v13 }
  0x7e   : >> { %2647 = vmatprep.subr.bf16.mxu1 %v2780_v24  ;;  %2628 = vmatpush3.bf16.msra.mxu0 %v2774_v13 }
  0x7f   : >> { %2501 = vmatprep.subr.bf16.mxu0 %v2775_v22 }
  0x81   : >> { %2648 = vmatpush3.bf16.msra.mxu1 %v2780_v24 }
  0x82   : >> { %2649 = vmatprep.subr.bf16.mxu1 %v2783_v16 }
  0x83   : >> { %992 = vmatmul.mubr.bf16.gmra.mxu0 %v3148_v54  ;;  %1298 = vmatmul.mubr.bf16.gmra.mxu1 %v3055_v63  ;;  %v639_v63 = vrot.slane %v3233_v37, 1  ;;  %v2795_v37 = vld [vmem:[%s3577_s1 + $0x208] sm:$0xff]  }
  0x84   : >> { %999 = vmatprep.mubr.bf16.mxu0 %v3278_v18  ;;  %1305 = vmatprep.mubr.bf16.mxu1 %v3109_v33 }
  0x85   : >> { %2650 = vmatpush3.bf16.msra.mxu1 %v2783_v16  ;;  %v641_v36 = vsel %vm638_vm0, %v639_v63, %v640_v34 }
  0x86   : >> { %2651 = vmatprep.subr.bf16.mxu1 %v2786_v28 }
  0x89   : >> { %2652 = vmatpush3.bf16.msra.mxu1 %v2786_v28 }
  0x8a   : >> { %2653 = vmatprep.subr.bf16.mxu1 %v2789_v32 }
  0x8b   : >> { %1000 = vmatmul.mubr.bf16.gmra.mxu0 %v3184_v7  ;;  %1306 = vmatmul.mubr.bf16.gmra.mxu1 %v3059_v1 }
  0x8c   : >> { %1007 = vmatprep.mubr.bf16.mxu0 %v3297_v30  ;;  %1313 = vmatprep.mubr.bf16.mxu1 %v3157_v57 }
  0x8d   : >> { %2654 = vmatpush3.bf16.msra.mxu1 %v2789_v32 }
  0x8e   : >> { %2655 = vmatprep.subr.bf16.mxu1 %v2792_v35 }
  0x91   : >> { %2656 = vmatpush3.bf16.msra.mxu1 %v2792_v35 }
  0x92   : >> { %2657 = vmatprep.subr.bf16.mxu1 %v2795_v37 }
  0x93   : >> { %1008 = vmatmul.mubr.bf16.gmra.mxu0 %v3193_v12  ;;  %1314 = vmatmul.mubr.bf16.gmra.mxu1 %v3098_v27 }
  0x94   : >> { %2629 = vmatprep.mubr.bf16.mxu0 %v641_v36  ;;  %1321 = vmatprep.mubr.bf16.mxu1 %v3205_v21 }
  0x95   : >> { %2658 = vmatpush3.bf16.msra.mxu1 %v2795_v37 }
  0x96   : >> { %2659 = vmatprep.subr.bf16.mxu1 %v2798_v39 }
  0x99   : >> { %2660 = vmatpush3.bf16.msra.mxu1 %v2798_v39 }
  0x9b   : >> { %2630 = vmatmul.mubr.bf16.vlgmr.msra.gmra.mxu0 %v3073_v14  ;;  %1322 = vmatmul.mubr.bf16.gmra.mxu1 %v3105_v31  ;;  %v2782_v14 = vld [vmem:[%s3577_s1 + $0x1a8] sm:$0xff]  }
  0x9c   : >> { %2502 = vmatpush3.bf16.msra.mxu0 %v2776_v40  ;;  %2633 = vmatprep.mubr.bf16.mxu0 %v3082_v19 }
  0x9d   : >> { %2503 = vmatprep.subr.bf16.mxu0 %v2778_v42  ;;  %1329 = vmatprep.mubr.bf16.mxu1 %v3249_v48 }
  0xa0   : >> { %2504 = vmatpush3.bf16.msra.mxu0 %v2779_v43 }
  0xa1   : >> { %2505 = vmatprep.subr.bf16.mxu0 %v2781_v44 }
  0xa3   : >> { %2634 = vmatmul.mubr.bf16.gmra.mxu0 %v3117_v38  ;;  %1330 = vmatmul.mubr.bf16.gmra.mxu1 %v3140_v49 }
  0xa4   : >> { %2506 = vmatpush3.bf16.msra.mxu0 %v2782_v14  ;;  %2637 = vmatprep.mubr.bf16.mxu0 %v3125_v41 }
  0xa5   : >> { %2507 = vmatprep.subr.bf16.mxu0 %v2784_v45  ;;  %1337 = vmatprep.mubr.bf16.mxu1 %v3263_v6 }
  0xa8   : >> { %2508 = vmatpush3.bf16.msra.mxu0 %v2785_v46 }
  0xa9   : >> { %2509 = vmatprep.subr.bf16.mxu0 %v2787_v47 }
  0xab   : >> { %2638 = vmatmul.mubr.bf16.gmra.mxu0 %v3161_v58  ;;  %1338 = vmatmul.mubr.bf16.gmra.mxu1 %v3148_v54 }
  0xac   : >> { %2510 = vmatpush3.bf16.msra.mxu0 %v2788_v50  ;;  %2641 = vmatprep.mubr.bf16.mxu0 %v3173_v0 }
  0xad   : >> { %2511 = vmatprep.subr.bf16.mxu0 %v2790_v51  ;;  %1345 = vmatprep.mubr.bf16.mxu1 %v3278_v18 }
  0xb0   : >> { %2512 = vmatpush3.bf16.msra.mxu0 %v2791_v52 }
  0xb1   : >> { %2513 = vmatprep.subr.bf16.mxu0 %v2793_v53 }
  0xb3   : >> { %2642 = vmatmul.mubr.bf16.gmra.mxu0 %v3208_v23  ;;  %1346 = vmatmul.mubr.bf16.gmra.mxu1 %v3184_v7 }
  0xb4   : >> { %2514 = vmatpush3.bf16.msra.mxu0 %v2794_v56  ;;  %1675 = vmatprep.mubr.bf16.mxu0 %v3109_v33  ;;  %v2800_v33 = vld [vmem:[%s2919_s5 + $0x98] ss:$0 sps:$4 sm:$0xff]  }
  0xb5   : >> { %2515 = vmatprep.subr.bf16.mxu0 %v2796_v59  ;;  %2661 = vmatprep.mubr.bf16.mxu1 %v3082_v19  ;;  %v2799_v19 = vld [vmem:[%s2919_s5 + $0x90] sm:$0xff]   ;;  %s2252_s5 = sshll.u32 %s2833_s25, 7  ;;  %s3581_s25 = smov %s291_s7 }
  0xb6   : >> { %s1957_s28 = sshra.s32 %s2252_s5, 3 }
  0xb7   : >> { %s2269_s29 = sshll.u32 %s1957_s28, 2 }
  0xb8   : >> { %2516 = vmatpush3.bf16.msra.mxu0 %v2797_v60  ;;  %s3506_s4 = scalar_lea.vmem %s2889_s24, %s2269_s29 }
  0xbb   : >> { %1676 = vmatmul.mubr.bf16.vlgmr.msra.gmra.mxu0 %v3059_v1  ;;  %2662 = vmatmul.mubr.bf16.vlgmr.msra.gmra.mxu1 %v3117_v38  ;;  %v666_v1 = vrot.slane %v2799_v19, 1  ;;  %v667_v38 = vrot.slane %v2800_v33, 1 }
  0xbc   : >> { %1683 = vmatprep.mubr.bf16.mxu0 %v3157_v57  ;;  %2665 = vmatprep.mubr.bf16.mxu1 %v3125_v41  ;;  %v617_v41 = vshrl.u32 %v2799_v19, 16 }
  0xc3   : >> { %1684 = vmatmul.mubr.bf16.gmra.mxu0 %v3098_v27  ;;  %2666 = vmatmul.mubr.bf16.gmra.mxu1 %v3161_v58  ;;  %v668_v27 = vsel %vm638_vm0, %v666_v1, %v667_v38  ;;  %v624_v58 = vshll.u32 %v2800_v33, 16 }
  0xc4   : >> { %1691 = vmatprep.mubr.bf16.mxu0 %v3205_v21  ;;  %2669 = vmatprep.mubr.bf16.mxu1 %v3173_v0 }
  0xc5   : >> { %v626_v21 = vrot.slane %v624_v58, 1 }
  0xcb   : >> { %1692 = vmatmul.mubr.bf16.gmra.mxu0 %v3105_v31  ;;  %2670 = vmatmul.mubr.bf16.gmra.mxu1 %v3208_v23  ;;  %v619_v31 = vshll.u32 %v2799_v19, 16 }
  0xcc   : >> { %1699 = vmatprep.mubr.bf16.mxu0 %v3249_v48  ;;  %2673 = vmatprep.mubr.bf16.mxu1 %v3221_v29 }
  0xcd   : >> { %v621_v57 = vrot.slane %v619_v31, 1 }
  0xcf   : >> { %v622_v0 = vor.u32 %v621_v57, %v617_v41 }
  0xd3   : >> { %1700 = vmatmul.mubr.bf16.gmra.mxu0 %v3140_v49  ;;  %2674 = vmatmul.mubr.bf16.gmra.mxu1 %v668_v27  ;;  %v627_v49 = vsel %vm507_vm1, %v622_v0, %v626_v21 }
  0xd4   : >> { %1707 = vmatprep.mubr.bf16.mxu0 %v3263_v6 }
  0xdb   : >> { %1708 = vmatmul.mubr.bf16.gmra.mxu0 %v3148_v54 }
  0xdc   : >> { %1715 = vmatprep.mubr.bf16.mxu0 %v3278_v18 }
  0xe3   : >> { %1716 = vmatmul.mubr.bf16.gmra.mxu0 %v3184_v7 }
  0xe4   : >> { %1723 = vmatprep.mubr.bf16.mxu0 %v3297_v30 }
  0xeb   : >> { %1724 = vmatmul.mubr.bf16.gmra.mxu0 %v3193_v12 }
  0xec   : >> { %1731 = vmatprep.mubr.bf16.mxu0 %v627_v49 }
  0xf3   : >> { %1732 = vmatmul.mubr.bf16.gmra.mxu0 %v2799_v19 }
 0x11b   : >> { %v2357_v23 = vpop.f32.mrf.mxu0  ;;  %v2599_v54 = vpop.f32.mrf.mxu1 }
 0x11d   : >> { %v2358_v29 = vpop.f32.mrf.mxu0  ;;  %v1050_v48 = vpop.f32.mrf.mxu1 }
 0x11e   : >> { %v2359_v61 = vadd.f32 %v2358_v29, %v2357_v23 }
 0x11f   : >> { %v2360_v62 = vpop.f32.mrf.mxu0  ;;  %v2600_v2 = vpop.f32.mrf.mxu1 }
 0x120   : >> { %v1051_v3 = vadd.f32 %v2359_v61, %v1050_v48 }
 0x121   : >> { %v2361_v4 = vpop.f32.mrf.mxu0  ;;  %v1053_v7 = vpop.f32.mrf.mxu1 }
 0x122   : >> { %v2362_v55 = vadd.f32 %v2361_v4, %v2360_v62 }
 0x123   : >> { %v2363_v5 = vpop.f32.mrf.mxu0  ;;  %v2603_v6 = vpop.f32.mrf.mxu1 }
 0x124   : >> { %v3405_v8 = vadd.f32 %v2362_v55, %v1053_v7 }
 0x125   : >> { %v2364_v9 = vpop.f32.mrf.mxu0  ;;  %v1066_v10 = vpop.f32.mrf.mxu1 }
 0x126   : >> { %v2365_v12 = vadd.f32 %v2364_v9, %v2363_v5 }
 0x127   : >> { %v2366_v11 = vpop.f32.mrf.mxu0  ;;  %v2604_v13 = vpop.f32.mrf.mxu1 }
 0x128   : >> { %v1059_v15 = vadd.f32 %v2599_v54, %v2365_v12 }
 0x129   : >> { %v2367_v17 = vpop.f32.mrf.mxu0  ;;  %v1069_v18 = vpop.f32.mrf.mxu1 }
 0x12a   : >> { %v2368_v20 = vadd.f32 %v2367_v17, %v2366_v11 }
 0x12b   : >> { %v2369_v24 = vpop.f32.mrf.mxu0  ;;  %v2607_v22 = vpop.f32.mrf.mxu1 }
 0x12c   : >> { %v3407_v16 = vadd.f32 %v2600_v2, %v2368_v20 }
 0x12d   : >> { %v2370_v25 = vpop.f32.mrf.mxu0  ;;  %v1082_v26 = vpop.f32.mrf.mxu1 }
 0x12e   : >> { %v2371_v28 = vadd.f32 %v2370_v25, %v2369_v24 }
 0x12f   : >> { %v2372_v30 = vpop.f32.mrf.mxu0  ;;  %v2608_v32 = vpop.f32.mrf.mxu1 }
 0x130   : >> { %v1067_v63 = vadd.f32 %v2371_v28, %v1066_v10 }
 0x131   : >> { %v2373_v34 = vpop.f32.mrf.mxu0  ;;  %v1085_v35 = vpop.f32.mrf.mxu1 }
 0x132   : >> { %v2374_v36 = vadd.f32 %v2373_v34, %v2372_v30 }
 0x133   : >> { %v2375_v37 = vpop.f32.mrf.mxu0  ;;  %v2611_v39 = vpop.f32.mrf.mxu1 }
 0x134   : >> { %v3409_v40 = vadd.f32 %v2374_v36, %v1069_v18 }
 0x135   : >> { %v2376_v42 = vpop.f32.mrf.mxu0  ;;  %v1098_v43 = vpop.f32.mrf.mxu1 }
 0x136   : >> { %v2377_v44 = vadd.f32 %v2376_v42, %v2375_v37 }
 0x137   : >> { %v2378_v14 = vpop.f32.mrf.mxu0  ;;  %v2612_v45 = vpop.f32.mrf.mxu1 }
 0x138   : >> { %v1075_v46 = vadd.f32 %v2603_v6, %v2377_v44 }
 0x139   : >> { %v2379_v47 = vpop.f32.mrf.mxu0  ;;  %v1101_v51 = vpop.f32.mrf.mxu1 }
 0x13a   : >> { %v2380_v50 = vadd.f32 %v2379_v47, %v2378_v14 }
 0x13b   : >> { %v2381_v52 = vpop.f32.mrf.mxu0  ;;  %v2437_v59 = vpop.f32.mrf.mxu1 }
 0x13c   : >> { %v3411_v53 = vadd.f32 %v2604_v13, %v2380_v50 }
 0x13d   : >> { %v2382_v56 = vpop.f32.mrf.mxu0  ;;  %v2438_v1 = vpop.f32.mrf.mxu1 }
 0x13e   : >> { %v2383_v60 = vadd.f32 %v2382_v56, %v2381_v52  ;;  %v2439_v38 = vadd.f32 %v2438_v1, %v2437_v59 }
 0x13f   : >> { %v2384_v19 = vpop.f32.mrf.mxu0  ;;  %v3413_v31 = vpop.f32.mrf.mxu1 }
 0x140   : >> { %v1083_v33 = vadd.f32 %v2383_v60, %v1082_v26  ;;  %v3415_v58 = vadd.f32 %v2439_v38, %v1051_v3 }
 0x141   : >> { %v2385_v27 = vpop.f32.mrf.mxu0  ;;  %v3419_v21 = vpop.f32.mrf.mxu1 }
 0x142   : >> { %v2386_v41 = vadd.f32 %v2385_v27, %v2384_v19 }
 0x143   : >> { %v2387_v57 = vpop.f32.mrf.mxu0  ;;  %v2443_v23 = vpop.f32.mrf.mxu1 }
 0x144   : >> { %v3417_v0 = vadd.f32 %v2386_v41, %v1085_v35 }
 0x145   : >> { %v2388_v49 = vpop.f32.mrf.mxu0  ;;  %v2444_v61 = vpop.f32.mrf.mxu1 }
 0x146   : >> { %v2389_v54 = vadd.f32 %v2388_v49, %v2387_v57  ;;  %v2445_v62 = vadd.f32 %v2444_v61, %v2443_v23 }
 0x147   : >> { %v2390_v29 = vpop.f32.mrf.mxu0  ;;  %v3421_v4 = vpop.f32.mrf.mxu1 }
 0x148   : >> { %v1091_v48 = vadd.f32 %v2607_v22, %v2389_v54  ;;  %v3423_v5 = vadd.f32 %v2445_v62, %v1059_v15 }
 0x149   : >> { %v2391_v2 = vpop.f32.mrf.mxu0  ;;  %v3427_v6 = vpop.f32.mrf.mxu1 }
 0x14a   : >> { %v2392_v7 = vadd.f32 %v2391_v2, %v2390_v29 }
 0x14b   : >> { %v2393_v55 = vpop.f32.mrf.mxu0  ;;  %v2449_v10 = vpop.f32.mrf.mxu1 }
 0x14c   : >> { %v3425_v3 = vadd.f32 %v2608_v32, %v2392_v7 }
 0x14d   : >> { %v2394_v9 = vpop.f32.mrf.mxu0  ;;  %v2450_v17 = vpop.f32.mrf.mxu1 }
 0x14e   : >> { %v2395_v12 = vadd.f32 %v2394_v9, %v2393_v55  ;;  %v2451_v18 = vadd.f32 %v2450_v17, %v2449_v10 }
 0x14f   : >> { %v2396_v11 = vpop.f32.mrf.mxu0  ;;  %v3429_v24 = vpop.f32.mrf.mxu1 }
 0x150   : >> { %v1099_v13 = vadd.f32 %v2395_v12, %v1098_v43  ;;  %v3431_v26 = vadd.f32 %v2451_v18, %v1067_v63 }
 0x151   : >> { %v2397_v20 = vpop.f32.mrf.mxu0  ;;  %v3435_v28 = vpop.f32.mrf.mxu1 }
 0x152   : >> { %v2398_v22 = vadd.f32 %v2397_v20, %v2396_v11 }
 0x153   : >> { %v2399_v25 = vpop.f32.mrf.mxu0  ;;  %v2455_v32 = vpop.f32.mrf.mxu1 }
 0x154   : >> { %v3433_v15 = vadd.f32 %v2398_v22, %v1101_v51 }
 0x155   : >> { %v2400_v30 = vpop.f32.mrf.mxu0  ;;  %v2456_v37 = vpop.f32.mrf.mxu1 }
 0x156   : >> { %v2401_v34 = vadd.f32 %v2400_v30, %v2399_v25  ;;  %v2457_v42 = vadd.f32 %v2456_v37, %v2455_v32 }
 0x157   : >> { %v2402_v35 = vpop.f32.mrf.mxu0  ;;  %v3437_v44 = vpop.f32.mrf.mxu1 }
 0x158   : >> { %v1107_v36 = vadd.f32 %v2611_v39, %v2401_v34  ;;  %v3441_v50 = vadd.f32 %v2457_v42, %v1075_v46 }
 0x159   : >> { %v2403_v43 = vpop.f32.mrf.mxu0  ;;  %v3443_v51 = vpop.f32.mrf.mxu1 }
 0x15a   : >> { %v2404_v14 = vadd.f32 %v2403_v43, %v2402_v35 }
 0x15b   : >> { %v3439_v47 = vpop.f32.mrf.mxu0  ;;  %v2461_v56 = vpop.f32.mrf.mxu1 }
 0x15c   : >> { %v1110_v63 = vadd.f32 %v2612_v45, %v2404_v14 }
 0x15d   : >> { %v1388_v52 = vpop.f32.mrf.mxu0  ;;  %v2462_v60 = vpop.f32.mrf.mxu1 }
 0x15e   : >> { %v2463_v19 = vadd.f32 %v2462_v60, %v2461_v56 }
 0x15f   : >> { %v3445_v59 = vpop.f32.mrf.mxu0  ;;  %v3447_v1 = vpop.f32.mrf.mxu1 }
 0x160   : >> { %v3451_v27 = vadd.f32 %v2463_v19, %v1083_v33 }
 0x161   : >> { %v1391_v39 = vpop.f32.mrf.mxu0  ;;  %v3453_v41 = vpop.f32.mrf.mxu1 }
 0x163   : >> { %v3449_v38 = vpop.f32.mrf.mxu0  ;;  %v2467_v45 = vpop.f32.mrf.mxu1 }
 0x165   : >> { %v3455_v46 = vpop.f32.mrf.mxu0  ;;  %v2468_v49 = vpop.f32.mrf.mxu1 }
 0x166   : >> { %v2469_v23 = vadd.f32 %v2468_v49, %v2467_v45  ;;  %v2442_v49 = vadd.f32 %v3419_v21, %v3413_v31  ;;  %v3495_v31 = vld [vmem:[%s3578_s2] ss:$0 sm:$0xff] }
 0x167   : >> { %v3457_v57 = vpop.f32.mrf.mxu0  ;;  %v3461_v29 = vpop.f32.mrf.mxu1 }
 0x168   : >> { %v1332_v61 = vadd.f32 %v2469_v23, %v1091_v48 }
 0x169   : >> { %v3459_v54 = vpop.f32.mrf.mxu0  ;;  %v3463_v2 = vpop.f32.mrf.mxu1 }
 0x16b   : >> { %v2639_v62 = vpop.f32.mrf.mxu0  ;;  %v2473_v55 = vpop.f32.mrf.mxu1 }
 0x16c   : >> { %v3465_v7 = vadd.f32 %v2639_v62, %v1332_v61 }
 0x16d   : >> { %v3467_v33 = vpop.f32.mrf.mxu0  ;;  %v2474_v10 = vpop.f32.mrf.mxu1 }
 0x16e   : >> { %v2475_v12 = vadd.f32 %v2474_v10, %v2473_v55  ;;  %v1389_v55 = vadd.f32 %v1388_v52, %v3415_v58  ;;  %v2448_v52 = vadd.f32 %v3427_v6, %v3421_v4 }
 0x16f   : >> { %v3469_v9 = vpop.f32.mrf.mxu0  ;;  %v3473_v17 = vpop.f32.mrf.mxu1 }
 0x170   : >> { %v3475_v20 = vadd.f32 %v2475_v12, %v1099_v13 }
 0x171   : >> { %v3471_v11 = vpop.f32.mrf.mxu0  ;;  %v3477_v48 = vpop.f32.mrf.mxu1 }
 0x173   : >> { %v2643_v18 = vpop.f32.mrf.mxu0  ;;  %v2479_v25 = vpop.f32.mrf.mxu1 }
 0x175   : >> { %v3479_v22 = vpop.f32.mrf.mxu0  ;;  %v2480_v32 = vpop.f32.mrf.mxu1 }
 0x176   : >> { %v2481_v34 = vadd.f32 %v2480_v32, %v2479_v25  ;;  %v1295_v32 = vadd.f32 %v2442_v49, %v3405_v8 }
 0x177   : >> { %v2644_v30 = vpop.f32.mrf.mxu0  ;;  %v2482_v37 = vpop.f32.mrf.mxu1 }
 0x178   : >> { %v1348_v42 = vadd.f32 %v2481_v34, %v1107_v36 }
 0x179   : >> { %v3481_v35 = vpop.f32.mrf.mxu0  ;;  %v2483_v14 = vpop.f32.mrf.mxu1 }
 0x17a   : >> { %v3483_v56 = vadd.f32 %v2643_v18, %v1348_v42  ;;  %v2484_v60 = vadd.f32 %v2483_v14, %v2482_v37 }
 0x17b   : >> { %v2517_v43 = vpop.f32.mrf.mxu0  ;;  %v2663_v45 = vpop.f32.mrf.mxu1 }
 0x17c   : >> { %v1351_v23 = vadd.f32 %v2484_v60, %v1110_v63  ;;  %v1392_v63 = vadd.f32 %v1391_v39, %v1295_v32 }
 0x17d   : >> { %v2518_v19 = vpop.f32.mrf.mxu0  ;;  %v1774_v62 = vpop.f32.mrf.mxu1 }
 0x17e   : >> { %v2519_v13 = vadd.f32 %v2518_v19, %v2517_v43  ;;  %v3488_v10 = vadd.f32 %v2644_v30, %v1351_v23  ;;  %v1397_v19 = vadd.f32 %v3439_v47, %v3423_v5  ;;  %v2454_v5 = vadd.f32 %v3435_v28, %v3429_v24 }
 0x17f   : >> { %v2520_v61 = vpop.f32.mrf.mxu0  ;;  %v2664_v18 = vpop.f32.mrf.mxu1 }
 0x180   : >> { %v1775_v36 = vadd.f32 %v2519_v13, %v1774_v62 }
 0x181   : >> { %v2521_v12 = vpop.f32.mrf.mxu0  ;;  %v1777_v21 = vpop.f32.mrf.mxu1 }
 0x182   : >> { %v2522_v25 = vadd.f32 %v2521_v12, %v2520_v61  ;;  %v1837_v34 = vadd.f32 %v1775_v36, %v1389_v55  ;;  %v1303_v61 = vadd.f32 %v2448_v52, %v3407_v16 }
 0x183   : >> { %v2523_v37 = vpop.f32.mrf.mxu0  ;;  %v2667_v43 = vpop.f32.mrf.mxu1 }
 0x184   : >> { %v1778_v42 = vadd.f32 %v2522_v25, %v1777_v21  ;;  %v1860_v8 = vadd.f32 %v3495_v31, %v1837_v34  ;;  %v1400_v12 = vadd.f32 %v3445_v59, %v1303_v61 }
 0x185   : >> { %v2524_v58 = vpop.f32.mrf.mxu0  ;;  %v1790_v23 = vpop.f32.mrf.mxu1 }
 0x186   : >> { %v2525_v30 = vadd.f32 %v2524_v58, %v2523_v37  ;;  %v1838_v14 = vadd.f32 %v1778_v42, %v1392_v63  ;;  %v1876_v62 = vmax.f32 %v1860_v8, 0.0  ;;  %v1405_v63 = vadd.f32 %v3455_v46, %v3431_v26 }
 0x187   : >> { %v2526_v60 = vpop.f32.mrf.mxu0  ;;  %v2668_v32 = vpop.f32.mrf.mxu1  ;;  %v2460_v26 = vadd.f32 %v3443_v51, %v3437_v44 }
 0x188   : >> { %v1783_v13 = vadd.f32 %v2663_v45, %v2525_v30  ;;  %v1861_v49 = vadd.f32 %v3495_v31, %v1838_v14 }
 0x189   : >> { %v2527_v39 = vpop.f32.mrf.mxu0  ;;  %v1793_v24 = vpop.f32.mrf.mxu1 }
 0x18a   : >> { %v1839_v4 = vadd.f32 %v1783_v13, %v1397_v19  ;;  %v2528_v6 = vadd.f32 %v2527_v39, %v2526_v60  ;;  %v1877_v55 = vmax.f32 %v1861_v49, 0.0 }
 0x18b   : >> { %v2529_v36 = vpop.f32.mrf.mxu0  ;;  %v2671_v49 = vpop.f32.mrf.mxu1 }
 0x18c   : >> { %v1786_v25 = vadd.f32 %v2664_v18, %v2528_v6  ;;  %v2297_v47 = vpack.c.bf16 %v1877_v55, %v1876_v62  ;;  %v1862_v34 = vadd.f32 %v3495_v31, %v1839_v4  ;;  %v1311_v18 = vadd.f32 %v2454_v5, %v3409_v40 }
 0x18d   : >> { %v2530_v45 = vpop.f32.mrf.mxu0  ;;  %v1413_v4 = vadd.f32 %v3449_v38, %v3441_v50  ;;  %v1319_v62 = vadd.f32 %v2460_v26, %v3411_v53  ;;  %v2466_v50 = vadd.f32 %v3453_v41, %v3447_v1 }
 0x18e   : >> { %v1840_v16 = vadd.f32 %v1786_v25, %v1400_v12  ;;  %v2531_v37 = vadd.f32 %v2530_v45, %v2529_v36  ;;  %2298 = vst [vmem:[%s3506_s4] sm:$0xff] %v2297_v47   ;;  %v1878_v28 = vmax.f32 %v1862_v34, 0.0  ;;  %v1408_v60 = vadd.f32 %v3459_v54, %v1311_v18  ;;  %v1806_v36 = vpop.f32.mrf.mxu1 }
 0x18f   : >> { %v2532_v21 = vpop.f32.mrf.mxu0  ;;  %v1416_v47 = vadd.f32 %v3457_v57, %v1319_v62 }
 0x190   : >> { %v1863_v59 = vadd.f32 %v3495_v31, %v1840_v16  ;;  %v1791_v42 = vadd.f32 %v2531_v37, %v1790_v23  ;;  %v2672_v16 = vpop.f32.mrf.mxu1 }
 0x191   : >> { %v2533_v58 = vpop.f32.mrf.mxu0 }
 0x192   : >> { %v1879_v52 = vmax.f32 %v1863_v59, 0.0  ;;  %v1841_v30 = vadd.f32 %v1791_v42, %v1405_v63  ;;  %v2534_v8 = vadd.f32 %v2533_v58, %v2532_v21  ;;  %v1421_v63 = vadd.f32 %v3467_v33, %v3451_v27  ;;  %v1809_v18 = vpop.f32.mrf.mxu1 }
 0x193   : >> { %v2535_v14 = vpop.f32.mrf.mxu0  ;;  %v2472_v27 = vadd.f32 %v3463_v2, %v3461_v29 }
 0x194   : >> { %v2302_v19 = vpack.c.bf16 %v1879_v52, %v1878_v28  ;;  %v1794_v13 = vadd.f32 %v2534_v8, %v1793_v24  ;;  %v1864_v39 = vadd.f32 %v3495_v31, %v1841_v30 }
 0x195   : >> { %v2536_v46 = vpop.f32.mrf.mxu0 }
 0x196   : >> { %2334 = vst [vmem:[%s3506_s4 + $0x8] sm:$0xff] %v2302_v19   ;;  %v1842_v40 = vadd.f32 %v1794_v13, %v1408_v60  ;;  %v2537_v23 = vadd.f32 %v2536_v46, %v2535_v14  ;;  %v1880_v44 = vmax.f32 %v1864_v39, 0.0  ;;  %v2675_v14 = vpop.f32.mrf.mxu1  ;;  %v1335_v39 = vadd.f32 %v2472_v27, %v3425_v3 }
 0x197   : >> { %v2538_v61 = vpop.f32.mrf.mxu0 }
 0x198   : >> { %v1865_v6 = vadd.f32 %v3495_v31, %v1842_v40  ;;  %v1799_v54 = vadd.f32 %v2667_v43, %v2537_v23  ;;  %v1822_v40 = vpop.f32.mrf.mxu1 }
 0x199   : >> { %v2539_v55 = vpop.f32.mrf.mxu0 }
 0x19a   : >> { %v1881_v51 = vmax.f32 %v1865_v6, 0.0  ;;  %v1843_v12 = vadd.f32 %v1799_v54, %v1413_v4  ;;  %v2540_v25 = vadd.f32 %v2539_v55, %v2538_v61  ;;  %v1432_v6 = vadd.f32 %v3469_v9, %v1335_v39 }
 0x19b   : >> { %v2541_v5 = vpop.f32.mrf.mxu0  ;;  %v2478_v55 = vadd.f32 %v3477_v48, %v3473_v17 }
 0x19c   : >> { %v2307_v45 = vpack.c.bf16 %v1881_v51, %v1880_v44  ;;  %v1802_v34 = vadd.f32 %v2668_v32, %v2540_v25  ;;  %v1866_v43 = vadd.f32 %v3495_v31, %v1843_v12  ;;  %v1327_v32 = vadd.f32 %v2466_v50, %v3417_v0  ;;  %v2676_v44 = vpop.f32.mrf.mxu1 }
 0x19d   : >> { %v2542_v38 = vpop.f32.mrf.mxu0 }
 0x19e   : >> { %2335 = vst [vmem:[%s3506_s4 + $0x10] sm:$0xff] %v2307_v45   ;;  %v1844_v53 = vadd.f32 %v1802_v34, %v1416_v47  ;;  %v2543_v37 = vadd.f32 %v2542_v38, %v2541_v5  ;;  %v1882_v1 = vmax.f32 %v1866_v43, 0.0  ;;  %v1424_v52 = vadd.f32 %v3471_v11, %v1327_v32  ;;  %v1825_v45 = vpop.f32.mrf.mxu1 }
 0x19f   : >> { %v2544_v21 = vpop.f32.mrf.mxu0  ;;  %v1343_v5 = vadd.f32 %v2478_v55, %v3433_v15 }
 0x1a0   : >> { %v1867_v59 = vadd.f32 %v3495_v31, %v1844_v53  ;;  %v1807_v57 = vadd.f32 %v2543_v37, %v1806_v36 }
 0x1a1   : >> { %v2545_v42 = vpop.f32.mrf.mxu0 }
 0x1a2   : >> { %v1883_v41 = vmax.f32 %v1867_v59, 0.0  ;;  %v1845_v58 = vadd.f32 %v1807_v57, %v1421_v63  ;;  %v2546_v24 = vadd.f32 %v2545_v42, %v2544_v21 }
 0x1a3   : >> { %v2547_v28 = vpop.f32.mrf.mxu0 }
 0x1a4   : >> { %v2312_v30 = vpack.c.bf16 %v1883_v41, %v1882_v1  ;;  %v1810_v8 = vadd.f32 %v2546_v24, %v1809_v18  ;;  %v1868_v60 = vadd.f32 %v3495_v31, %v1845_v58 }
 0x1a5   : >> { %v2548_v33 = vpop.f32.mrf.mxu0 }
 0x1a6   : >> { %2336 = vst [vmem:[%s3506_s4 + $0x18] sm:$0xff] %v2312_v30   ;;  %v1846_v0 = vadd.f32 %v1810_v8, %v1424_v52  ;;  %v2549_v19 = vadd.f32 %v2548_v33, %v2547_v28  ;;  %v1884_v23 = vmax.f32 %v1868_v60, 0.0 }
 0x1a7   : >> { %v2550_v13 = vpop.f32.mrf.mxu0 }
 0x1a8   : >> { %v1869_v26 = vadd.f32 %v3495_v31, %v1846_v0  ;;  %v1815_v46 = vadd.f32 %v2671_v49, %v2549_v19 }
 0x1a9   : >> { %v2551_v11 = vpop.f32.mrf.mxu0 }
 0x1aa   : >> { %v1885_v61 = vmax.f32 %v1869_v26, 0.0  ;;  %v1847_v29 = vadd.f32 %v1815_v46, %v3465_v7  ;;  %v2552_v2 = vadd.f32 %v2551_v11, %v2550_v13  ;;  %v1437_v7 = vadd.f32 %v3479_v22, %v3475_v20 }
 0x1ab   : >> { %v2553_v4 = vpop.f32.mrf.mxu0 }
 0x1ac   : >> { %v2317_v54 = vpack.c.bf16 %v1885_v61, %v1884_v23  ;;  %v1818_v62 = vadd.f32 %v2672_v16, %v2552_v2  ;;  %v1870_v3 = vadd.f32 %v3495_v31, %v1847_v29  ;;  %v1440_v16 = vadd.f32 %v3481_v35, %v1343_v5 }
 0x1ad   : >> { %v2554_v36 = vpop.f32.mrf.mxu0 }
 0x1ae   : >> { %2337 = vst [vmem:[%s3506_s4 + $0x20] sm:$0xff] %v2317_v54   ;;  %v1848_v49 = vadd.f32 %v1818_v62, %v1432_v6  ;;  %v2555_v51 = vadd.f32 %v2554_v36, %v2553_v4  ;;  %v1886_v17 = vmax.f32 %v1870_v3, 0.0 }
 0x1af   : >> { %v2556_v12 = vpop.f32.mrf.mxu0 }
 0x1b0   : >> { %v1871_v25 = vadd.f32 %v3495_v31, %v1848_v49  ;;  %v1823_v9 = vadd.f32 %v2555_v51, %v1822_v40 }
 0x1b1   : >> { %v2557_v47 = vpop.f32.mrf.mxu0 }
 0x1b2   : >> { %v1887_v48 = vmax.f32 %v1871_v25, 0.0  ;;  %v1849_v34 = vadd.f32 %v1823_v9, %v1437_v7  ;;  %v2558_v50 = vadd.f32 %v2557_v47, %v2556_v12 }
 0x1b3   : >> { %v2559_v38 = vpop.f32.mrf.mxu0 }
 0x1b4   : >> { %v2322_v43 = vpack.c.bf16 %v1887_v48, %v1886_v17  ;;  %v1826_v53 = vadd.f32 %v2558_v50, %v1825_v45  ;;  %v1872_v20 = vadd.f32 %v3495_v31, %v1849_v34 }
 0x1b5   : >> { %v2560_v37 = vpop.f32.mrf.mxu0 }
 0x1b6   : >> { %2338 = vst [vmem:[%s3506_s4 + $0x28] sm:$0xff] %v2322_v43   ;;  %v1850_v22 = vadd.f32 %v1826_v53, %v1440_v16  ;;  %v2561_v21 = vadd.f32 %v2560_v37, %v2559_v38  ;;  %v1888_v32 = vmax.f32 %v1872_v20, 0.0 }
 0x1b7   : >> { %v2562_v63 = vpop.f32.mrf.mxu0 }
 0x1b8   : >> { %v1873_v15 = vadd.f32 %v3495_v31, %v1850_v22  ;;  %v1831_v59 = vadd.f32 %v2675_v14, %v2561_v21 }
 0x1b9   : >> { %v2563_v57 = vpop.f32.mrf.mxu0 }
 0x1ba   : >> { %v1889_v42 = vmax.f32 %v1873_v15, 0.0  ;;  %v1851_v18 = vadd.f32 %v1831_v59, %v3483_v56  ;;  %v2564_v35 = vadd.f32 %v2563_v57, %v2562_v63 }
 0x1bc   : >> { %v2327_v1 = vpack.c.bf16 %v1889_v42, %v1888_v32  ;;  %v1834_v41 = vadd.f32 %v2676_v44, %v2564_v35  ;;  %v1874_v58 = vadd.f32 %v3495_v31, %v1851_v18 }
 0x1be   : >> { %2339 = vst [vmem:[%s3506_s4 + $0x30] sm:$0xff] %v2327_v1   ;;  %v1852_v24 = vadd.f32 %v1834_v41, %v3488_v10  ;;  %v1890_v52 = vmax.f32 %v1874_v58, 0.0 }
 0x1c0   : >> { %v1875_v28 = vadd.f32 %v3495_v31, %v1852_v24 }
 0x1c2   : >> { %v1891_v30 = vmax.f32 %v1875_v28, 0.0  ;;  %267 = sbr.rel (!%p2925_p7) target bundleno = 24 (0x18), region = 164 }
 0x1c4   : >> { %v2332_v8 = vpack.c.bf16 %v1891_v30, %v1890_v52 }
 0x1c6   : >> { %2340 = vst [vmem:[%s3506_s4 + $0x38] sm:$0xff] %v2332_v8  }
 0x1c7 PF: > { %s13_s14 = sadd.s32 1, %s2829_s14   ;;  %s3582_s12 = smov %s2825_s13 }
 0x1c8   : > { %p10_p8 = scmp.ge.s32.totalorder %s13_s14, 4   ;;  %s3583_s13 = smov %s3585_s15 }
 0x1ca   :  { %12 = sbr.rel (!%p10_p8) target bundleno = 2 (0x2), region = 175 }
 0x1cf   :  { %2004 = vsyncmov [#allocation3] }
 0x1d2   :  { %s2005_s25 = vpop.sfrf %2004 }
 0x1d3   :  { %p2272_p9 = scmp.ne.s32.totalorder %s2005_s25, 0 }
 0x1d5   :  { %2009 = shalt.err (%p2272_p9)  }
 0x1d6   :  { %2011 = vsyncmov [#allocation3 + $0x1] }
 0x1d9   :  { %s2012_s7 = vpop.sfrf %2011 }
 0x1da   :  { %p2273_p10 = scmp.ne.s32.totalorder %s2012_s7, 0 }
 0x1dc   :  { %2016 = shalt.err (%p2273_p10)  }

</bundles_post_ra>
